<compile_context>
chip_gen: v7x
topology: tpu7x:2x2x1
jax: 0.10.0
libtpu: 0.0.40
codegen_flags: <defaults>
</compile_context>

<pallas_src>
import functools

import jax
import jax.numpy as jnp
from jax.experimental import pallas as pl
from jax.experimental.pallas import tpu as pltpu


def _round_up(x, m):
    return (x + m - 1) // m * m


def _mlp_kernel(x_ref, w1_ref, b1_ref, w2_ref, b2_ref, w3_ref, b3_ref, o_ref):
    # bf16 operands feed the MXU; accumulation, bias add and ReLU stay in f32.
    x = x_ref[...]
    h1 = jnp.dot(x, w1_ref[...], preferred_element_type=jnp.float32) + b1_ref[...]
    h1 = jnp.maximum(h1, 0.0)
    h2 = jnp.dot(h1.astype(w2_ref.dtype), w2_ref[...],
                 preferred_element_type=jnp.float32) + b2_ref[...]
    h2 = jnp.maximum(h2, 0.0)
    logits = jnp.dot(h2.astype(w3_ref.dtype), w3_ref[...],
                     preferred_element_type=jnp.float32) + b3_ref[...]
    o_ref[...] = logits.astype(o_ref.dtype)


@functools.partial(jax.jit, static_argnames=("block_b",))
def net_forward(x, w1, b1, w2, b2, w3, b3, *, block_b=256):
    """x: (B, len_input); w_i: (in, out); b_i: (1, out). Returns (B, len_output) f32."""
    B, d_in = x.shape
    h1_dim = w1.shape[1]
    h2_dim = w2.shape[1]
    d_out = w3.shape[1]

    # --- lane-dense output: pad out-features to a multiple of 128 (sliced off later) ---
    d_out_p = _round_up(d_out, 128)
    if d_out_p != d_out:
        w3 = jnp.pad(w3, ((0, 0), (0, d_out_p - d_out)))
        b3 = jnp.pad(b3, ((0, 0), (0, d_out_p - d_out)))

    # --- batch tiling: large tiles, batch zero-padded to a tile multiple ---
    blk = min(block_b, _round_up(B, 8))
    B_p = _round_up(B, blk)
    if B_p != B:
        x = jnp.pad(x, ((0, B_p - B), (0, 0)))
    grid = (B_p // blk,)

    # --- bf16 operands for the MXU; biases kept f32 for f32 VPU epilogue ---
    xb = x.astype(jnp.bfloat16)
    w1b = w1.astype(jnp.bfloat16)
    w2b = w2.astype(jnp.bfloat16)
    w3b = w3.astype(jnp.bfloat16)
    b1f = b1.astype(jnp.float32)
    b2f = b2.astype(jnp.float32)
    b3f = b3.astype(jnp.float32)

    resident = lambda shape: pl.BlockSpec(shape, lambda i: (0, 0))  # VMEM-resident weights

    flops = 2 * B_p * (d_in * h1_dim + h1_dim * h2_dim + h2_dim * d_out_p)
    bytes_accessed = (
        xb.size * 2 + w1b.size * 2 + w2b.size * 2 + w3b.size * 2
        + (b1f.size + b2f.size + b3f.size) * 4
        + B_p * d_out_p * 4
    )

    out = pl.pallas_call(
        _mlp_kernel,
        out_shape=jax.ShapeDtypeStruct((B_p, d_out_p), jnp.float32),
        grid=grid,
        in_specs=[
            pl.BlockSpec((blk, d_in), lambda i: (i, 0)),   # x tile (batch-tiled)
            resident((d_in, h1_dim)),                      # w1
            resident((1, h1_dim)),                         # b1
            resident((h1_dim, h2_dim)),                    # w2
            resident((1, h2_dim)),                         # b2
            resident((h2_dim, d_out_p)),                   # w3 (lane-padded)
            resident((1, d_out_p)),                        # b3 (lane-padded)
        ],
        out_specs=pl.BlockSpec((blk, d_out_p), lambda i: (i, 0)),
        compiler_params=pltpu.CompilerParams(
            dimension_semantics=("parallel",),             # shard batch tiles across TCs (v7x)
        ),
        cost_estimate=pl.CostEstimate(
            flops=flops, transcendentals=0, bytes_accessed=bytes_accessed),
    )(xb, w1b, b1f, w2b, b2f, w3b, b3f)

    return out[:B, :d_out]


def init_params(key, len_input, len_output, hidden):
    """Deterministic init mimicking PyTorch nn.Linear default (uniform +/-1/sqrt(fan_in)).
    Weights are returned already transposed to (in, out)."""
    ks = jax.random.split(key, 6)

    def linear(kw, kb, fan_in, fan_out):
        bound = 1.0 / jnp.sqrt(fan_in)
        w = jax.random.uniform(kw, (fan_in, fan_out), jnp.float32, -bound, bound)
        b = jax.random.uniform(kb, (1, fan_out), jnp.float32, -bound, bound)
        return w, b

    w1, b1 = linear(ks[0], ks[1], len_input, hidden)
    w2, b2 = linear(ks[2], ks[3], hidden, hidden)
    w3, b3 = linear(ks[4], ks[5], hidden, len_output)
    return w1, b1, w2, b2, w3, b3


if __name__ == "__main__":
    # Module-default hidden size (512); batch chosen so the grid has 2 steps
    # (block_b=256) and both v7x TensorCores get a tile.
    BATCH, LEN_INPUT, HIDDEN, LEN_OUTPUT = 512, 64, 512, 10

    key = jax.random.PRNGKey(0)
    k_x, k_p = jax.random.split(key)
    x = jax.random.normal(k_x, (BATCH, LEN_INPUT), jnp.float32)
    params = init_params(k_p, LEN_INPUT, LEN_OUTPUT, HIDDEN)

    out = net_forward(x, *params, block_b=256)
    out = jax.block_until_ready(out)

    # Reference in plain JAX using the same bf16-operand / f32-accumulate math path.
    w1, b1, w2, b2, w3, b3 = params
    bf = jnp.bfloat16
    ref = jnp.maximum(jnp.dot(x.astype(bf), w1.astype(bf),
                              preferred_element_type=jnp.float32) + b1, 0.0)
    ref = jnp.maximum(jnp.dot(ref.astype(bf), w2.astype(bf),
                              preferred_element_type=jnp.float32) + b2, 0.0)
    ref = jnp.dot(ref.astype(bf), w3.astype(bf),
                  preferred_element_type=jnp.float32) + b3

    assert out.shape == (BATCH, LEN_OUTPUT)
    assert jnp.allclose(out, ref, atol=2e-2, rtol=2e-2)

    print("KERNEL_OK")
</pallas_src>

<mosaic_0001>
module attributes {stable_mosaic.version = 11 : i64} {
  func.func @_mlp_kernel(%arg0: i32, %arg1: memref<256x64xbf16, #tpu.memory_space<vmem>>, %arg2: memref<64x512xbf16, #tpu.memory_space<vmem>>, %arg3: memref<1x512xf32, #tpu.memory_space<vmem>>, %arg4: memref<512x512xbf16, #tpu.memory_space<vmem>>, %arg5: memref<1x512xf32, #tpu.memory_space<vmem>>, %arg6: memref<512x128xbf16, #tpu.memory_space<vmem>>, %arg7: memref<1x128xf32, #tpu.memory_space<vmem>>, %arg8: memref<256x128xf32, #tpu.memory_space<vmem>>) attributes {dimension_semantics = [#tpu.dimension_semantics<parallel>], iteration_bounds = array<i64: 2>, scalar_prefetch = 0 : i64, scratch_operands = 0 : i64, tpu.core_type = #tpu.core_type<tc>, window_params = [{transform_indices = @transform_0, window_bounds = array<i64: 256, 64>}, {pipeline_mode = #tpu.pipeline_mode<synchronous>, transform_indices = @transform_1, window_bounds = array<i64: 64, 512>}, {pipeline_mode = #tpu.pipeline_mode<synchronous>, transform_indices = @transform_2, window_bounds = array<i64: 1, 512>}, {pipeline_mode = #tpu.pipeline_mode<synchronous>, transform_indices = @transform_3, window_bounds = array<i64: 512, 512>}, {pipeline_mode = #tpu.pipeline_mode<synchronous>, transform_indices = @transform_4, window_bounds = array<i64: 1, 512>}, {pipeline_mode = #tpu.pipeline_mode<synchronous>, transform_indices = @transform_5, window_bounds = array<i64: 512, 128>}, {pipeline_mode = #tpu.pipeline_mode<synchronous>, transform_indices = @transform_6, window_bounds = array<i64: 1, 128>}, {transform_indices = @transform_7, window_bounds = array<i64: 256, 128>}]} {
    %c0 = arith.constant 0 : index
    %c0_0 = arith.constant 0 : index
    %0 = vector.load %arg1[%c0, %c0_0] : memref<256x64xbf16, #tpu.memory_space<vmem>>, vector<256x64xbf16>
    %c0_1 = arith.constant 0 : index
    %c0_2 = arith.constant 0 : index
    %1 = vector.load %arg2[%c0_1, %c0_2] : memref<64x512xbf16, #tpu.memory_space<vmem>>, vector<64x512xbf16>
    %cst = arith.constant dense<0.000000e+00> : vector<256x512xf32>
    %2 = tpu.matmul %0, %1, %cst {dimension_numbers = #tpu.dot_dimension_numbers<[1], [0], [0], [1], [0, 0, 1, 1], [], []>} : vector<256x64xbf16>, vector<64x512xbf16>, vector<256x512xf32> -> vector<256x512xf32>
    %c0_3 = arith.constant 0 : index
    %c0_4 = arith.constant 0 : index
    %3 = vector.load %arg3[%c0_3, %c0_4] : memref<1x512xf32, #tpu.memory_space<vmem>>, vector<1x512xf32>
    %4 = vector.broadcast %3 : vector<1x512xf32> to vector<256x512xf32>
    %5 = arith.addf %2, %4 : vector<256x512xf32>
    %cst_5 = arith.constant 0.000000e+00 : f32
    %6 = vector.broadcast %cst_5 : f32 to vector<256x512xf32>
    %7 = arith.maximumf %5, %6 : vector<256x512xf32>
    %8 = arith.truncf %7 : vector<256x512xf32> to vector<256x512xbf16>
    %c0_6 = arith.constant 0 : index
    %c0_7 = arith.constant 0 : index
    %9 = vector.load %arg4[%c0_6, %c0_7] : memref<512x512xbf16, #tpu.memory_space<vmem>>, vector<512x512xbf16>
    %cst_8 = arith.constant dense<0.000000e+00> : vector<256x512xf32>
    %10 = tpu.matmul %8, %9, %cst_8 {dimension_numbers = #tpu.dot_dimension_numbers<[1], [0], [0], [1], [0, 0, 1, 1], [], []>} : vector<256x512xbf16>, vector<512x512xbf16>, vector<256x512xf32> -> vector<256x512xf32>
    %c0_9 = arith.constant 0 : index
    %c0_10 = arith.constant 0 : index
    %11 = vector.load %arg5[%c0_9, %c0_10] : memref<1x512xf32, #tpu.memory_space<vmem>>, vector<1x512xf32>
    %12 = vector.broadcast %11 : vector<1x512xf32> to vector<256x512xf32>
    %13 = arith.addf %10, %12 : vector<256x512xf32>
    %cst_11 = arith.constant 0.000000e+00 : f32
    %14 = vector.broadcast %cst_11 : f32 to vector<256x512xf32>
    %15 = arith.maximumf %13, %14 : vector<256x512xf32>
    %16 = arith.truncf %15 : vector<256x512xf32> to vector<256x512xbf16>
    %c0_12 = arith.constant 0 : index
    %c0_13 = arith.constant 0 : index
    %17 = vector.load %arg6[%c0_12, %c0_13] : memref<512x128xbf16, #tpu.memory_space<vmem>>, vector<512x128xbf16>
    %cst_14 = arith.constant dense<0.000000e+00> : vector<256x128xf32>
    %18 = tpu.matmul %16, %17, %cst_14 {dimension_numbers = #tpu.dot_dimension_numbers<[1], [0], [0], [1], [0, 0, 1, 1], [], []>} : vector<256x512xbf16>, vector<512x128xbf16>, vector<256x128xf32> -> vector<256x128xf32>
    %c0_15 = arith.constant 0 : index
    %c0_16 = arith.constant 0 : index
    %19 = vector.load %arg7[%c0_15, %c0_16] : memref<1x128xf32, #tpu.memory_space<vmem>>, vector<1x128xf32>
    %20 = vector.broadcast %19 : vector<1x128xf32> to vector<256x128xf32>
    %21 = arith.addf %18, %20 : vector<256x128xf32>
    %c0_17 = arith.constant 0 : index
    %c0_18 = arith.constant 0 : index
    %22 = vector.load %arg8[%c0_17, %c0_18] : memref<256x128xf32, #tpu.memory_space<vmem>>, vector<256x128xf32>
    tpu.vector_store %arg8[%c0_17, %c0_18], %21 {strides = array<i32>} : memref<256x128xf32, #tpu.memory_space<vmem>>, vector<256x128xf32>,
    return
  }
  func.func @transform_0(%arg0: i32) -> (i32, i32) {
    %c0_i32 = arith.constant 0 : i32
    %c0_i32_0 = arith.constant 0 : i32
    return %arg0, %c0_i32 : i32, i32
  }
  func.func @transform_1(%arg0: i32) -> (i32, i32) {
    %c0_i32 = arith.constant 0 : i32
    %c0_i32_0 = arith.constant 0 : i32
    %c0_i32_1 = arith.constant 0 : i32
    return %c0_i32, %c0_i32_0 : i32, i32
  }
  func.func @transform_2(%arg0: i32) -> (i32, i32) {
    %c0_i32 = arith.constant 0 : i32
    %c0_i32_0 = arith.constant 0 : i32
    %c0_i32_1 = arith.constant 0 : i32
    return %c0_i32, %c0_i32_0 : i32, i32
  }
  func.func @transform_3(%arg0: i32) -> (i32, i32) {
    %c0_i32 = arith.constant 0 : i32
    %c0_i32_0 = arith.constant 0 : i32
    %c0_i32_1 = arith.constant 0 : i32
    return %c0_i32, %c0_i32_0 : i32, i32
  }
  func.func @transform_4(%arg0: i32) -> (i32, i32) {
    %c0_i32 = arith.constant 0 : i32
    %c0_i32_0 = arith.constant 0 : i32
    %c0_i32_1 = arith.constant 0 : i32
    return %c0_i32, %c0_i32_0 : i32, i32
  }
  func.func @transform_5(%arg0: i32) -> (i32, i32) {
    %c0_i32 = arith.constant 0 : i32
    %c0_i32_0 = arith.constant 0 : i32
    %c0_i32_1 = arith.constant 0 : i32
    return %c0_i32, %c0_i32_0 : i32, i32
  }
  func.func @transform_6(%arg0: i32) -> (i32, i32) {
    %c0_i32 = arith.constant 0 : i32
    %c0_i32_0 = arith.constant 0 : i32
    %c0_i32_1 = arith.constant 0 : i32
    return %c0_i32, %c0_i32_0 : i32, i32
  }
  func.func @transform_7(%arg0: i32) -> (i32, i32) {
    %c0_i32 = arith.constant 0 : i32
    %c0_i32_0 = arith.constant 0 : i32
    return %arg0, %c0_i32 : i32, i32
  }
}

</mosaic_0001>

<bundles_post_ra>
// kernel: net_forward.1
= control target key start
LH: loop header
LB: loop body
LE: loop exit
PB: predicated region body
PF: predicated region fallthrough
CT: control target
= control target key end

     0   :  { %s4605_s24 = smov 0   ;;  %s5735_s0 = inlined_call_operand.vmem [shape: bf16[512,64], index: 0, kind: input, shape index: {}]   ;;  %s5736_s1 = inlined_call_operand.vmem [shape: bf16[64,512], index: 1, kind: input, shape index: {}]   ;;  %s5737_s2 = inlined_call_operand.vmem [shape: f32[1,512], index: 2, kind: input, shape index: {}]   ;;  %s5738_s3 = inlined_call_operand.vmem [shape: bf16[512,512], index: 3, kind: input, shape index: {}]   ;;  %s5739_s4 = inlined_call_operand.vmem [shape: f32[1,512], index: 4, kind: input, shape index: {}]   ;;  %s5740_s5 = inlined_call_operand.vmem [shape: bf16[512,128], index: 5, kind: input, shape index: {}]   ;;  %s5741_s6 = inlined_call_operand.vmem [shape: f32[1,128], index: 6, kind: input, shape index: {}]   ;;  %s5742_s7 = inlined_call_operand.vmem [shape: f32[512,128], index: 7, kind: output, shape index: {}]  }
   0x1 LB: > { %s3567_s25 = sadd.s32 4294967295, %s4562_s24   ;;  %p3571_p0 = scmp.ge.s32.totalorder %s4562_s24, 1  ;;  %s4562_s24 = sphi %s4605_s24, %s17_s24  }
   0x2   : > { %p238_p1 = scmp.lt.s32.totalorder %s4562_s24, 3 }
   0x4   : > { %p239_p2 = pnand %p3571_p0, %p238_p1 }
   0x5   : > { %v4292_v0 = vld [vmem:[%s5736_s1 + $0x4] ss:$16 sps:$4 sm:$0xff] (!%p239_p2)   ;;  %s3572_s28 = sshll.u32 (!%p239_p2), %s3567_s25, 5  ;;  %v4294_v1 = vld [vmem:[%s5736_s1] ss:$16 sps:$4 sm:$0xff] (!%p239_p2)   ;;  %v4564_v2 = vmov (!%p239_p2), 0  }
   0x6   : > { %242 = sbr.rel (%p239_p2) target bundleno = 937 (0x3a9), region = 48  ;;  %594 = vmatprep.mubr.bf16.mxu0 (!%p239_p2), %v4564_v2  ;;  %p271_p3 = scmp.lt.s32.totalorder (!%p239_p2), %s3572_s28, 63  ;;  %787 = vmatprep.mubr.bf16.mxu1 (!%p239_p2), %v4564_v2  ;;  %v4295_v3 = vld [vmem:[%s5736_s1 + $0x24] ss:$16 sps:$4 sm:$0xff] (!%p239_p2)   ;;  %v4297_v4 = vld [vmem:[%s5736_s1 + $0x20] ss:$16 sps:$4 sm:$0xff] (!%p239_p2)  }
   0x7   : > { %562 = vmatprep.subr.bf16.mxu0 (!%p239_p2), %v4292_v0  ;;  %v4298_v5 = vld [vmem:[%s5736_s1 + $0x44] ss:$16 sps:$4 sm:$0xff] (!%p239_p2)   ;;  %v4314_v6 = vld [vmem:[%s5736_s1 + $0xc] ss:$16 sps:$4 sm:$0xff] (!%p239_p2)   ;;  %v4316_v7 = vld [vmem:[%s5736_s1 + $0x8] ss:$16 sps:$4 sm:$0xff] (!%p239_p2)  }
   0x8   : > { %563 = vmatpush1.bf16.msra.mxu0 (!%p239_p2), %v4294_v1  ;;  %v4300_v8 = vld [vmem:[%s5736_s1 + $0x40] ss:$16 sps:$4 sm:$0xff] (!%p239_p2)   ;;  %v4301_v9 = vld [vmem:[%s5736_s1 + $0x64] ss:$16 sps:$4 sm:$0xff] (!%p239_p2)   ;;  %755 = vmatprep.subr.bf16.mxu1 (!%p239_p2), %v4314_v6  ;;  %vm513_vm0 = vcmask (!%p239_p2), 523264  }
   0x9   : > { %564 = vmatprep.subr.bf16.mxu0 (!%p239_p2), %v4295_v3  ;;  %756 = vmatpush1.bf16.msra.mxu1 (!%p239_p2), %v4316_v7  ;;  %v4303_v10 = vld [vmem:[%s5736_s1 + $0x60] ss:$16 sps:$4 sm:$0xff] (!%p239_p2)   ;;  %v4318_v12 = vld [vmem:[%s5736_s1 + $0x2c] ss:$16 sps:$4 sm:$0xff] (!%p239_p2)   ;;  %v4320_v13 = vld [vmem:[%s5736_s1 + $0x28] ss:$16 sps:$4 sm:$0xff] (!%p239_p2)  }
   0xa   : > { %v4321_v14 = vld [vmem:[%s5736_s1 + $0x4c] ss:$16 sps:$4 sm:$0xff] (!%p239_p2)   ;;  %757 = vmatprep.subr.bf16.mxu1 (!%p239_p2), %v4318_v12  ;;  %v4323_v15 = vld [vmem:[%s5736_s1 + $0x48] ss:$16 sps:$4 sm:$0xff] (!%p239_p2)   ;;  %v4328_v18 = vld [vmem:[%s5738_s3] ss:$16 sps:$4 sm:$0xff] (!%p239_p2)  }
   0xb   : > { %v4325_v17 = vld [vmem:[%s5736_s1 + $0x6c] ss:$16 sps:$4 sm:$0xff] (!%p239_p2)   ;;  %v4330_v19 = vld [vmem:[%s5738_s3 + $0x4] ss:$16 sps:$4 sm:$0xff] (!%p239_p2)   ;;  %v4327_v20 = vld [vmem:[%s5736_s1 + $0x68] ss:$16 sps:$4 sm:$0xff] (!%p239_p2)  }
   0xc   : > { %565 = vmatpush1.bf16.msra.mxu0 (!%p239_p2), %v4297_v4  ;;  %v4333_v21 = vld [vmem:[%s5738_s3 + $0xc] ss:$16 sps:$4 sm:$0xff] (!%p239_p2)   ;;  %v4335_v22 = vld [vmem:[%s5738_s3 + $0x20] ss:$16 sps:$4 sm:$0xff] (!%p239_p2)   ;;  %v4337_v23 = vld [vmem:[%s5738_s3 + $0x24] ss:$16 sps:$4 sm:$0xff] (!%p239_p2)  }
   0xd   : > { %s5744_s28 = smov (!%p271_p3, %s3572_s28), 63  ;;  %566 = vmatprep.subr.bf16.mxu0 %v4298_v5  ;;  %758 = vmatpush1.bf16.msra.mxu1 %v4320_v13  ;;  %v4331_v25 = vld [vmem:[%s5738_s3 + $0x8] ss:$16 sps:$4 sm:$0xff]   ;;  %v4340_v26 = vld [vmem:[%s5738_s3 + $0x2c] ss:$16 sps:$4 sm:$0xff]  }
   0xe   : > { %s3573_s14 = sshll.u32 %s5744_s28, 2  ;;  %759 = vmatprep.subr.bf16.mxu1 %v4321_v14  ;;  %v4344_v27 = vld [vmem:[%s5738_s3 + $0x44] ss:$16 sps:$4 sm:$0xff]   ;;  %v4342_v28 = vld [vmem:[%s5738_s3 + $0x40] ss:$16 sps:$4 sm:$0xff]   ;;  %s3575_s15 = sshll.u32 %s5744_s28, 3 }
   0xf   : > { %s4636_s17 = scalar_lea.vmem %s5735_s0, %s3573_s14  ;;  %v4338_v29 = vld [vmem:[%s5738_s3 + $0x28] ss:$16 sps:$4 sm:$0xff]   ;;  %v4347_v30 = vld [vmem:[%s5738_s3 + $0x4c] ss:$16 sps:$4 sm:$0xff]   ;;  %v4351_v31 = vld [vmem:[%s5738_s3 + $0x64] ss:$16 sps:$4 sm:$0xff]   ;;  %s5667_s19 = scalar_lea.vmem %s5742_s7, %s3575_s15 }
  0x10   : > { %567 = vmatpush1.bf16.msra.mxu0 %v4300_v8  ;;  %v4304_v11 = vld [vmem:[%s4636_s17] sm:$0xff]   ;;  %v4305_v16 = vld [vmem:[%s4636_s17 + $0x8] sm:$0xff]   ;;  %v4306_v24 = vld [vmem:[%s4636_s17 + $0x10] sm:$0xff]  }
  0x11   : > { %568 = vmatprep.subr.bf16.mxu0 %v4301_v9  ;;  %760 = vmatpush1.bf16.msra.mxu1 %v4323_v15  ;;  %v4349_v32 = vld [vmem:[%s5738_s3 + $0x60] ss:$16 sps:$4 sm:$0xff]   ;;  %v4345_v33 = vld [vmem:[%s5738_s3 + $0x48] ss:$16 sps:$4 sm:$0xff]   ;;  %v4354_v35 = vld [vmem:[%s5738_s3 + $0x6c] ss:$16 sps:$4 sm:$0xff]  }
  0x12   : > { %761 = vmatprep.subr.bf16.mxu1 %v4325_v17  ;;  %v4307_v34 = vld [vmem:[%s4636_s17 + $0x18] sm:$0xff]   ;;  %v4358_v37 = vld [vmem:[%s5738_s3 + $0x84] ss:$16 sps:$4 sm:$0xff]   ;;  %v4356_v38 = vld [vmem:[%s5738_s3 + $0x80] ss:$16 sps:$4 sm:$0xff]  }
  0x13   : > { %v4352_v36 = vld [vmem:[%s5738_s3 + $0x68] ss:$16 sps:$4 sm:$0xff]   ;;  %v4364_v39 = vld [vmem:[%s5738_s3 + $0xa4] ss:$16 sps:$4 sm:$0xff]   ;;  %v4361_v40 = vld [vmem:[%s5738_s3 + $0x8c] ss:$16 sps:$4 sm:$0xff]  }
  0x14   : > { %569 = vmatpush1.bf16.msra.mxu0 %v4303_v10  ;;  %v4362_v41 = vld [vmem:[%s5738_s3 + $0xa0] ss:$16 sps:$4 sm:$0xff]   ;;  %v4359_v42 = vld [vmem:[%s5738_s3 + $0x88] ss:$16 sps:$4 sm:$0xff]   ;;  %v4367_v44 = vld [vmem:[%s5738_s3 + $0xac] ss:$16 sps:$4 sm:$0xff]  }
  0x15   : > { %1930 = vmatprep.subr.bf16.mxu0 %v4330_v19  ;;  %762 = vmatpush1.bf16.msra.mxu1 %v4327_v20  ;;  %v4308_v43 = vld [vmem:[%s4636_s17 + $0x20] sm:$0xff]   ;;  %v4365_v45 = vld [vmem:[%s5738_s3 + $0xa8] ss:$16 sps:$4 sm:$0xff]   ;;  %v4373_v49 = vld [vmem:[%s5738_s3 + $0xcc] ss:$16 sps:$4 sm:$0xff]  }
  0x16   : > { %2316 = vmatprep.subr.bf16.mxu1 %v4333_v21  ;;  %v4370_v46 = vld [vmem:[%s5738_s3 + $0xc4] ss:$16 sps:$4 sm:$0xff]   ;;  %v4368_v47 = vld [vmem:[%s5738_s3 + $0xc0] ss:$16 sps:$4 sm:$0xff]   ;;  %v4371_v51 = vld [vmem:[%s5738_s3 + $0xc8] ss:$16 sps:$4 sm:$0xff]  }
  0x17   : > { %3608 = vmatmul.mubr.msk.bf16.vlgmr.msra.gmra.mrb[0].mxu0 %vm513_vm0, %v4304_v11  ;;  %v4376_v48 = vld [vmem:[%s5738_s3 + $0xe4] ss:$16 sps:$4 sm:$0xff]   ;;  %v4374_v50 = vld [vmem:[%s5738_s3 + $0xe0] ss:$16 sps:$4 sm:$0xff]   ;;  %v4309_v52 = vld [vmem:[%s4636_s17 + $0x28] sm:$0xff]  }
  0x18   : > { %604 = vmatprep.mubr.bf16.mxu0 %v4564_v2  ;;  %1931 = vmatpush1.bf16.msra.mxu0 %v4328_v18  ;;  %v4379_v53 = vld [vmem:[%s5738_s3 + $0xec] ss:$16 sps:$4 sm:$0xff]   ;;  %v4377_v54 = vld [vmem:[%s5738_s3 + $0xe8] ss:$16 sps:$4 sm:$0xff]   ;;  %v4382_v55 = vld [vmem:[%s5738_s3 + $0x104] ss:$16 sps:$4 sm:$0xff]  }
  0x19   : > { %1932 = vmatprep.subr.bf16.mxu0 %v4337_v23  ;;  %3624 = vmatmul.mubr.msk.bf16.vlgmr.msra.gmra.mrb[0].mxu1 %vm513_vm0, %v4304_v11  ;;  %v4380_v56 = vld [vmem:[%s5738_s3 + $0x100] ss:$16 sps:$4 sm:$0xff]   ;;  %v4388_v57 = vld [vmem:[%s5738_s3 + $0x124] ss:$16 sps:$4 sm:$0xff]   ;;  %v4385_v58 = vld [vmem:[%s5738_s3 + $0x10c] ss:$16 sps:$4 sm:$0xff]  }
  0x1a   : > { %2317 = vmatpush1.bf16.msra.mxu1 %v4331_v25  ;;  %797 = vmatprep.mubr.bf16.mxu1 %v4564_v2  ;;  %v4386_v59 = vld [vmem:[%s5738_s3 + $0x120] ss:$16 sps:$4 sm:$0xff]   ;;  %v4383_v60 = vld [vmem:[%s5738_s3 + $0x108] ss:$16 sps:$4 sm:$0xff]   ;;  %v4391_v62 = vld [vmem:[%s5738_s3 + $0x12c] ss:$16 sps:$4 sm:$0xff]  }
  0x1b   : > { %2318 = vmatprep.subr.bf16.mxu1 %v4340_v26  ;;  %v4310_v61 = vld [vmem:[%s4636_s17 + $0x30] sm:$0xff]   ;;  %v4389_v63 = vld [vmem:[%s5738_s3 + $0x128] ss:$16 sps:$4 sm:$0xff]   ;;  %v4397_v4 = vld [vmem:[%s5738_s3 + $0x14c] ss:$16 sps:$4 sm:$0xff]  }
  0x1c   : > { %1933 = vmatpush1.bf16.msra.mxu0 %v4335_v22  ;;  %v4394_v0 = vld [vmem:[%s5738_s3 + $0x144] ss:$16 sps:$4 sm:$0xff]   ;;  %v4392_v1 = vld [vmem:[%s5738_s3 + $0x140] ss:$16 sps:$4 sm:$0xff]   ;;  %v4395_v6 = vld [vmem:[%s5738_s3 + $0x148] ss:$16 sps:$4 sm:$0xff]  }
  0x1d   : > { %1934 = vmatprep.subr.bf16.mxu0 %v4344_v27  ;;  %v4400_v3 = vld [vmem:[%s5738_s3 + $0x164] ss:$16 sps:$4 sm:$0xff]   ;;  %v4398_v5 = vld [vmem:[%s5738_s3 + $0x160] ss:$16 sps:$4 sm:$0xff]   ;;  %v4311_v7 = vld [vmem:[%s4636_s17 + $0x38] sm:$0xff]  }
  0x1e   : > { %2319 = vmatpush1.bf16.msra.mxu1 %v4338_v29  ;;  %v4403_v8 = vld [vmem:[%s5738_s3 + $0x16c] ss:$16 sps:$4 sm:$0xff]   ;;  %v4406_v9 = vld [vmem:[%s5738_s3 + $0x184] ss:$16 sps:$4 sm:$0xff]   ;;  %v4404_v10 = vld [vmem:[%s5738_s3 + $0x180] ss:$16 sps:$4 sm:$0xff]  }
  0x1f   : > { %3609 = vmatmul.mubr.msk.bf16.gmra.mrb[4].mxu0 %vm513_vm0, %v4305_v16  ;;  %2320 = vmatprep.subr.bf16.mxu1 %v4347_v30  ;;  %v4401_v11 = vld [vmem:[%s5738_s3 + $0x168] ss:$16 sps:$4 sm:$0xff]   ;;  %v4412_v12 = vld [vmem:[%s5738_s3 + $0x1a4] ss:$16 sps:$4 sm:$0xff]   ;;  %v4409_v13 = vld [vmem:[%s5738_s3 + $0x18c] ss:$16 sps:$4 sm:$0xff]  }
  0x20   : > { %614 = vmatprep.mubr.bf16.mxu0 %v4564_v2  ;;  %1935 = vmatpush1.bf16.msra.mxu0 %v4342_v28  ;;  %v4410_v14 = vld [vmem:[%s5738_s3 + $0x1a0] ss:$16 sps:$4 sm:$0xff]   ;;  %v4407_v15 = vld [vmem:[%s5738_s3 + $0x188] ss:$16 sps:$4 sm:$0xff]   ;;  %v4415_v17 = vld [vmem:[%s5738_s3 + $0x1ac] ss:$16 sps:$4 sm:$0xff]  }
  0x21   : > { %1936 = vmatprep.subr.bf16.mxu0 %v4351_v31  ;;  %3625 = vmatmul.mubr.msk.bf16.gmra.mrb[4].mxu1 %vm513_vm0, %v4305_v16  ;;  %v4312_v16 = vld [vmem:[%s4636_s17 + $0x40] sm:$0xff]   ;;  %v4413_v20 = vld [vmem:[%s5738_s3 + $0x1a8] ss:$16 sps:$4 sm:$0xff]   ;;  %v4421_v21 = vld [vmem:[%s5738_s3 + $0x1cc] ss:$16 sps:$4 sm:$0xff]  }
  0x22   : > { %807 = vmatprep.mubr.bf16.mxu1 %v4564_v2  ;;  %2321 = vmatpush1.bf16.msra.mxu1 %v4345_v33  ;;  %v4418_v18 = vld [vmem:[%s5738_s3 + $0x1c4] ss:$16 sps:$4 sm:$0xff]   ;;  %v4416_v19 = vld [vmem:[%s5738_s3 + $0x1c0] ss:$16 sps:$4 sm:$0xff]   ;;  %v4419_v22 = vld [vmem:[%s5738_s3 + $0x1c8] ss:$16 sps:$4 sm:$0xff]  }
  0x23   : > { %2322 = vmatprep.subr.bf16.mxu1 %v4354_v35  ;;  %v4313_v23 = vld [vmem:[%s4636_s17 + $0x48] sm:$0xff]   ;;  %v4324_v25 = vld [vmem:[%s4636_s17 + $0x58] sm:$0xff]   ;;  %v4424_v26 = vld [vmem:[%s5738_s3 + $0x1e4] ss:$16 sps:$4 sm:$0xff]  }
  0x24   : > { %1937 = vmatpush1.bf16.msra.mxu0 %v4349_v32  ;;  %v4427_v27 = vld [vmem:[%s5738_s3 + $0x1ec] ss:$16 sps:$4 sm:$0xff]   ;;  %v4422_v28 = vld [vmem:[%s5738_s3 + $0x1e0] ss:$16 sps:$4 sm:$0xff]   ;;  %v4425_v29 = vld [vmem:[%s5738_s3 + $0x1e8] ss:$16 sps:$4 sm:$0xff]  }
  0x25   : > { %1938 = vmatprep.subr.bf16.mxu0 %v4358_v37  ;;  %v4334_v30 = vld [vmem:[%s4636_s17 + $0x60] sm:$0xff]   ;;  %v4433_v32 = vld [vmem:[%s5738_s3 + $0x20c] ss:$16 sps:$4 sm:$0xff]  }
  0x26   : > { %2323 = vmatpush1.bf16.msra.mxu1 %v4352_v36  ;;  %v4430_v31 = vld [vmem:[%s5738_s3 + $0x204] ss:$16 sps:$4 sm:$0xff]   ;;  %v4341_v33 = vld [vmem:[%s4636_s17 + $0x68] sm:$0xff]   ;;  %v4355_v35 = vld [vmem:[%s4636_s17 + $0x78] sm:$0xff]   ;;  %v333_v36 = vlaneseq }
  0x27   : > { %3610 = vmatmul.mubr.msk.bf16.gmra.mrb[8].mxu0 %vm513_vm0, %v4306_v24  ;;  %2324 = vmatprep.subr.bf16.mxu1 %v4361_v40 }
  0x28   : > { %624 = vmatprep.mubr.bf16.mxu0 %v4564_v2  ;;  %1939 = vmatpush1.bf16.msra.mxu0 %v4356_v38  ;;  %v4947_v37 = vshrl.u32 %v333_v36, 7 }
  0x29   : > { %1940 = vmatprep.subr.bf16.mxu0 %v4364_v39  ;;  %3626 = vmatmul.mubr.msk.bf16.gmra.mrb[8].mxu1 %vm513_vm0, %v4306_v24  ;;  %v4317_v24 = vld [vmem:[%s4636_s17 + $0x50] sm:$0xff]   ;;  %v331_v39 = vld [vmem:[%s5737_s2] sm:$0xf] }
  0x2a   : > { %817 = vmatprep.mubr.bf16.mxu1 %v4564_v2  ;;  %2325 = vmatpush1.bf16.msra.mxu1 %v4359_v42  ;;  %v335_v38 = vsub.s32 0, %v4947_v37  ;;  %v339_v40 = vsub.s32 1, %v4947_v37 }
  0x2b   : > { %2326 = vmatprep.subr.bf16.mxu1 %v4367_v44 }
  0x2c   : > { %1941 = vmatpush1.bf16.msra.mxu0 %v4362_v41  ;;  %v4956_v41 = vrot.slane %v331_v39, %v335_v38 }
  0x2d   : > { %1942 = vmatprep.subr.bf16.mxu0 %v4370_v46 }
  0x2e   : > { %2327 = vmatpush1.bf16.msra.mxu1 %v4365_v45 }
  0x2f   : > { %3611 = vmatmul.mubr.msk.bf16.gmra.mrb[12].mxu0 %vm513_vm0, %v4307_v34  ;;  %2328 = vmatprep.subr.bf16.mxu1 %v4373_v49 }
  0x30   : > { %634 = vmatprep.mubr.bf16.mxu0 %v4564_v2  ;;  %1943 = vmatpush1.bf16.msra.mxu0 %v4368_v47 }
  0x31   : > { %1944 = vmatprep.subr.bf16.mxu0 %v4376_v48  ;;  %3627 = vmatmul.mubr.msk.bf16.gmra.mrb[12].mxu1 %vm513_vm0, %v4307_v34  ;;  %v4348_v34 = vld [vmem:[%s4636_s17 + $0x70] sm:$0xff]  }
  0x32   : > { %827 = vmatprep.mubr.bf16.mxu1 %v4564_v2  ;;  %2329 = vmatpush1.bf16.msra.mxu1 %v4371_v51 }
  0x33   : > { %2330 = vmatprep.subr.bf16.mxu1 %v4379_v53 }
  0x34   : > { %1945 = vmatpush1.bf16.msra.mxu0 %v4374_v50 }
  0x35   : > { %1946 = vmatprep.subr.bf16.mxu0 %v4382_v55  ;;  %v343_v55 = vsub.s32 2, %v4947_v37 }
  0x36   : > { %2331 = vmatpush1.bf16.msra.mxu1 %v4377_v54 }
  0x37   : > { %3612 = vmatmul.mubr.msk.bf16.gmra.mrb[16].mxu0 %vm513_vm0, %v4308_v43  ;;  %2332 = vmatprep.subr.bf16.mxu1 %v4385_v58  ;;  %v4428_v58 = vld [vmem:[%s5738_s3 + $0x200] ss:$16 sps:$4 sm:$0xff]  }
  0x38   : > { %644 = vmatprep.mubr.bf16.mxu0 %v4564_v2  ;;  %1947 = vmatpush1.bf16.msra.mxu0 %v4380_v56 }
  0x39   : > { %1948 = vmatprep.subr.bf16.mxu0 %v4388_v57  ;;  %3628 = vmatmul.mubr.msk.bf16.gmra.mrb[16].mxu1 %vm513_vm0, %v4308_v43 }
  0x3a   : > { %837 = vmatprep.mubr.bf16.mxu1 %v4564_v2  ;;  %2333 = vmatpush1.bf16.msra.mxu1 %v4383_v60  ;;  %v347_v60 = vsub.s32 3, %v4947_v37 }
  0x3b   : > { %2334 = vmatprep.subr.bf16.mxu1 %v4391_v62 }
  0x3c   : > { %1949 = vmatpush1.bf16.msra.mxu0 %v4386_v59  ;;  %v4431_v59 = vld [vmem:[%s5738_s3 + $0x208] ss:$16 sps:$4 sm:$0xff]  }
  0x3d   : > { %1950 = vmatprep.subr.bf16.mxu0 %v4394_v0  ;;  %v4439_v0 = vld [vmem:[%s5738_s3 + $0x22c] ss:$16 sps:$4 sm:$0xff]  }
  0x3e   : > { %2335 = vmatpush1.bf16.msra.mxu1 %v4389_v63  ;;  %v4436_v63 = vld [vmem:[%s5738_s3 + $0x224] ss:$16 sps:$4 sm:$0xff]  }
  0x3f   : > { %3613 = vmatmul.mubr.msk.bf16.gmra.mrb[20].mxu0 %vm513_vm0, %v4309_v52  ;;  %2336 = vmatprep.subr.bf16.mxu1 %v4397_v4 }
  0x40   : > { %654 = vmatprep.mubr.bf16.mxu0 %v4564_v2  ;;  %1951 = vmatpush1.bf16.msra.mxu0 %v4392_v1 }
  0x41   : > { %1952 = vmatprep.subr.bf16.mxu0 %v4400_v3  ;;  %3629 = vmatmul.mubr.msk.bf16.gmra.mrb[20].mxu1 %vm513_vm0, %v4309_v52 }
  0x42   : > { %847 = vmatprep.mubr.bf16.mxu1 %v4564_v2  ;;  %2337 = vmatpush1.bf16.msra.mxu1 %v4395_v6  ;;  %v4985_v6 = vrot.slane %v331_v39, %v343_v55 }
  0x43   : > { %2338 = vmatprep.subr.bf16.mxu1 %v4403_v8  ;;  %v4434_v8 = vld [vmem:[%s5738_s3 + $0x220] ss:$16 sps:$4 sm:$0xff]  }
  0x44   : > { %1953 = vmatpush1.bf16.msra.mxu0 %v4398_v5 }
  0x45   : > { %1954 = vmatprep.subr.bf16.mxu0 %v4406_v9  ;;  %v4437_v9 = vld [vmem:[%s5738_s3 + $0x228] ss:$16 sps:$4 sm:$0xff]  }
  0x46   : > { %2339 = vmatpush1.bf16.msra.mxu1 %v4401_v11 }
  0x47   : > { %3614 = vmatmul.mubr.msk.bf16.gmra.mrb[24].mxu0 %vm513_vm0, %v4310_v61  ;;  %2340 = vmatprep.subr.bf16.mxu1 %v4409_v13  ;;  %v4442_v13 = vld [vmem:[%s5738_s3 + $0x244] ss:$16 sps:$4 sm:$0xff]  }
  0x48   : > { %664 = vmatprep.mubr.bf16.mxu0 %v4564_v2  ;;  %1955 = vmatpush1.bf16.msra.mxu0 %v4404_v10  ;;  %v4996_v10 = vrot.slane %v331_v39, %v347_v60 }
  0x49   : > { %1956 = vmatprep.subr.bf16.mxu0 %v4412_v12  ;;  %3630 = vmatmul.mubr.msk.bf16.gmra.mrb[24].mxu1 %vm513_vm0, %v4310_v61 }
  0x4a   : > { %857 = vmatprep.mubr.bf16.mxu1 %v4564_v2  ;;  %2341 = vmatpush1.bf16.msra.mxu1 %v4407_v15 }
  0x4b   : > { %2342 = vmatprep.subr.bf16.mxu1 %v4415_v17 }
  0x4c   : > { %1957 = vmatpush1.bf16.msra.mxu0 %v4410_v14  ;;  %v4445_v14 = vld [vmem:[%s5738_s3 + $0x24c] ss:$16 sps:$4 sm:$0xff]  }
  0x4d   : > { %1958 = vmatprep.subr.bf16.mxu0 %v4418_v18 }
  0x4e   : > { %2343 = vmatpush1.bf16.msra.mxu1 %v4413_v20 }
  0x4f   : > { %3615 = vmatmul.mubr.msk.bf16.gmra.mrb[28].mxu0 %vm513_vm0, %v4311_v7  ;;  %2344 = vmatprep.subr.bf16.mxu1 %v4421_v21 }
  0x50   : > { %674 = vmatprep.mubr.bf16.mxu0 %v4564_v2  ;;  %1959 = vmatpush1.bf16.msra.mxu0 %v4416_v19  ;;  %v4440_v19 = vld [vmem:[%s5738_s3 + $0x240] ss:$16 sps:$4 sm:$0xff]  }
  0x51   : > { %3631 = vmatmul.mubr.msk.bf16.gmra.mrb[28].mxu1 %vm513_vm0, %v4311_v7  ;;  %1960 = vmatprep.subr.bf16.mxu0 %v4424_v26 }
  0x52   : > { %867 = vmatprep.mubr.bf16.mxu1 %v4564_v2  ;;  %2345 = vmatpush1.bf16.msra.mxu1 %v4419_v22 }
  0x53   : > { %2346 = vmatprep.subr.bf16.mxu1 %v4427_v27 }
  0x54   : > { %1961 = vmatpush1.bf16.msra.mxu0 %v4422_v28 }
  0x55   : > { %2123 = vmatprep.subr.bf16.mxu0 %v4430_v31 }
  0x56   : > { %2347 = vmatpush1.bf16.msra.mxu1 %v4425_v29 }
  0x57   : > { %3616 = vmatmul.mubr.msk.bf16.gmra.mrb[32].mxu0 %vm513_vm0, %v4312_v16  ;;  %2509 = vmatprep.subr.bf16.mxu1 %v4433_v32 }
  0x58   : > { %684 = vmatprep.mubr.bf16.mxu0 %v4564_v2 }
  0x59   : > { %3632 = vmatmul.mubr.msk.bf16.gmra.mrb[32].mxu1 %vm513_vm0, %v4312_v16 }
  0x5a   : > { %877 = vmatprep.mubr.bf16.mxu1 %v4564_v2 }
  0x5f   : > { %3617 = vmatmul.mubr.msk.bf16.gmra.mrb[36].mxu0 %vm513_vm0, %v4313_v23 }
  0x60   : > { %694 = vmatprep.mubr.bf16.mxu0 %v4564_v2 }
  0x61   : > { %3633 = vmatmul.mubr.msk.bf16.gmra.mrb[36].mxu1 %vm513_vm0, %v4313_v23 }
  0x62   : > { %887 = vmatprep.mubr.bf16.mxu1 %v4564_v2 }
  0x67   : > { %3618 = vmatmul.mubr.msk.bf16.gmra.mrb[40].mxu0 %vm513_vm0, %v4317_v24 }
  0x68   : > { %704 = vmatprep.mubr.bf16.mxu0 %v4564_v2 }
  0x69   : > { %3634 = vmatmul.mubr.msk.bf16.gmra.mrb[40].mxu1 %vm513_vm0, %v4317_v24  ;;  %v4443_v24 = vld [vmem:[%s5738_s3 + $0x248] ss:$16 sps:$4 sm:$0xff]  }
  0x6a   : > { %897 = vmatprep.mubr.bf16.mxu1 %v4564_v2 }
  0x6f   : > { %3619 = vmatmul.mubr.msk.bf16.gmra.mrb[44].mxu0 %vm513_vm0, %v4324_v25 }
  0x70   : > { %714 = vmatprep.mubr.bf16.mxu0 %v4564_v2 }
  0x71   : > { %3635 = vmatmul.mubr.msk.bf16.gmra.mrb[44].mxu1 %vm513_vm0, %v4324_v25  ;;  %v4448_v25 = vld [vmem:[%s5738_s3 + $0x264] ss:$16 sps:$4 sm:$0xff]  }
  0x72   : > { %907 = vmatprep.mubr.bf16.mxu1 %v4564_v2 }
  0x77   : > { %3620 = vmatmul.mubr.msk.bf16.gmra.mrb[48].mxu0 %vm513_vm0, %v4334_v30 }
  0x78   : > { %724 = vmatprep.mubr.bf16.mxu0 %v4564_v2 }
  0x79   : > { %3636 = vmatmul.mubr.msk.bf16.gmra.mrb[48].mxu1 %vm513_vm0, %v4334_v30  ;;  %v4451_v30 = vld [vmem:[%s5738_s3 + $0x26c] ss:$16 sps:$4 sm:$0xff]  }
  0x7a   : > { %917 = vmatprep.mubr.bf16.mxu1 %v4564_v2 }
  0x7f   : > { %3621 = vmatmul.mubr.msk.bf16.gmra.mrb[52].mxu0 %vm513_vm0, %v4341_v33 }
  0x80   : > { %734 = vmatprep.mubr.bf16.mxu0 %v4564_v2 }
  0x81   : > { %3637 = vmatmul.mubr.msk.bf16.gmra.mrb[52].mxu1 %vm513_vm0, %v4341_v33 }
  0x82   : > { %927 = vmatprep.mubr.bf16.mxu1 %v4564_v2 }
  0x87   : > { %3622 = vmatmul.mubr.msk.bf16.gmra.mrb[56].mxu0 %vm513_vm0, %v4348_v34 }
  0x88   : > { %744 = vmatprep.mubr.bf16.mxu0 %v4564_v2 }
  0x89   : > { %3638 = vmatmul.mubr.msk.bf16.gmra.mrb[56].mxu1 %vm513_vm0, %v4348_v34 }
  0x8a   : > { %937 = vmatprep.mubr.bf16.mxu1 %v4564_v2  ;;  %v4960_v2 = vrot.slane %v331_v39, %v339_v40 }
  0x8f   : > { %3623 = vmatmul.mubr.msk.bf16.gmra.mrb[60].mxu0 %vm513_vm0, %v4355_v35 }
  0x91   : > { %3639 = vmatmul.mubr.msk.bf16.gmra.mrb[60].mxu1 %vm513_vm0, %v4355_v35 }
  0xea   : > { %v596_v42 = vpop.f32.mrb[0].mxu0 }
  0xeb   : > { %v597_v43 = vadd.f32 %v596_v42, %v4956_v41  ;;  %v598_v44 = vpop.f32.mrb[1].mxu0 }
  0xec   : > { %v599_v45 = vadd.f32 %v598_v44, %v4960_v2  ;;  %v600_v46 = vpop.f32.mrb[2].mxu0  ;;  %v789_v17 = vpop.f32.mrb[0].mxu1 }
  0xed   : > { %v601_v47 = vadd.f32 %v600_v46, %v4956_v41  ;;  %v602_v48 = vpop.f32.mrb[3].mxu0  ;;  %v948_v50 = vmax.f32 %v597_v43, 0.0  ;;  %v790_v20 = vadd.f32 %v789_v17, %v4985_v6  ;;  %v791_v21 = vpop.f32.mrb[1].mxu1  ;;  %v4446_v46 = vld [vmem:[%s5738_s3 + $0x260] ss:$16 sps:$4 sm:$0xff]  }
  0xee   : > { %v603_v49 = vadd.f32 %v602_v48, %v4960_v2  ;;  %v949_v52 = vmax.f32 %v599_v45, 0.0  ;;  %v792_v26 = vadd.f32 %v791_v21, %v4996_v10  ;;  %v793_v27 = vpop.f32.mrb[2].mxu1 }
  0xef   : > { %v952_v51 = vmax.f32 %v601_v47, 0.0  ;;  %v950_v31 = vmax.f32 %v790_v20, 0.0  ;;  %v794_v32 = vadd.f32 %v793_v27, %v4985_v6  ;;  %v795_v33 = vpop.f32.mrb[3].mxu1  ;;  %v4449_v47 = vld [vmem:[%s5738_s3 + $0x268] ss:$16 sps:$4 sm:$0xff]  }
  0xf0   : > { %v953_v53 = vmax.f32 %v603_v49, 0.0  ;;  %v951_v36 = vmax.f32 %v792_v26, 0.0  ;;  %v796_v39 = vadd.f32 %v795_v33, %v4996_v10 }
  0xf1   : > { %v1076_v54 = vpack.c.bf16 %v952_v51, %v948_v50  ;;  %v954_v44 = vmax.f32 %v794_v32, 0.0  ;;  %v4454_v51 = vld [vmem:[%s5738_s3 + $0x284] ss:$16 sps:$4 sm:$0xff]  }
  0xf2   : > { %v1077_v56 = vpack.c.bf16 %v953_v53, %v949_v52  ;;  %v606_v57 = vpop.f32.mrb[4].mxu0  ;;  %v955_v48 = vmax.f32 %v796_v39, 0.0  ;;  %v4457_v52 = vld [vmem:[%s5738_s3 + $0x28c] ss:$16 sps:$4 sm:$0xff]  }
  0xf3   : > { %v607_v61 = vadd.f32 %v606_v57, %v4956_v41  ;;  %v608_v62 = vpop.f32.mrb[5].mxu0  ;;  %v5036_v53 = vpack.c.bf16 %v954_v44, %v950_v31 }
  0xf4   : > { %v609_v1 = vadd.f32 %v608_v62, %v4960_v2  ;;  %v610_v3 = vpop.f32.mrb[6].mxu0  ;;  %1962 = vmatprep.mubr.bf16.mxu0 %v1077_v56  ;;  %2348 = vmatprep.mubr.bf16.mxu1 %v1077_v56  ;;  %v5038_v57 = vpack.c.bf16 %v955_v48, %v951_v36  ;;  %v4464_v36 = vld [vmem:[%s5738_s3 + $0x2c0] ss:$16 sps:$4 sm:$0xff]  }
  0xf5   : > { %v611_v4 = vadd.f32 %v610_v3, %v4956_v41  ;;  %v612_v5 = vpop.f32.mrb[7].mxu0  ;;  %1963 = vmatmul.mubr.bf16.vlgmr.msra.gmra.mrb[64].mxu0 %v1076_v54  ;;  %2349 = vmatmul.mubr.bf16.vlgmr.msra.gmra.mrb[64].mxu1 %v1076_v54  ;;  %v956_v11 = vmax.f32 %v607_v61, 0.0  ;;  %v4452_v61 = vld [vmem:[%s5738_s3 + $0x280] ss:$16 sps:$4 sm:$0xff]   ;;  %v4455_v3 = vld [vmem:[%s5738_s3 + $0x288] ss:$16 sps:$4 sm:$0xff]  }
  0xf6   : > { %v613_v7 = vadd.f32 %v612_v5, %v4960_v2  ;;  %2124 = vmatpush1.bf16.msra.mxu0 %v4428_v58  ;;  %2510 = vmatpush1.bf16.msra.mxu1 %v4431_v59  ;;  %v957_v15 = vmax.f32 %v609_v1, 0.0  ;;  %v799_v58 = vpop.f32.mrb[4].mxu1 }
  0xf7   : > { %v960_v12 = vmax.f32 %v611_v4, 0.0  ;;  %2125 = vmatprep.subr.bf16.mxu0 %v4436_v63  ;;  %2511 = vmatprep.subr.bf16.mxu1 %v4439_v0  ;;  %v800_v62 = vadd.f32 %v799_v58, %v4985_v6  ;;  %v801_v63 = vpop.f32.mrb[5].mxu1  ;;  %v4460_v4 = vld [vmem:[%s5738_s3 + $0x2a4] ss:$16 sps:$4 sm:$0xff]  }
  0xf8   : > { %v961_v16 = vmax.f32 %v613_v7, 0.0  ;;  %v802_v5 = vadd.f32 %v801_v63, %v4996_v10  ;;  %v803_v7 = vpop.f32.mrb[6].mxu1 }
  0xf9   : > { %v1080_v18 = vpack.c.bf16 %v960_v12, %v956_v11  ;;  %v4463_v11 = vld [vmem:[%s5738_s3 + $0x2ac] ss:$16 sps:$4 sm:$0xff]   ;;  %v958_v12 = vmax.f32 %v800_v62, 0.0 }
  0xfa   : > { %v1081_v22 = vpack.c.bf16 %v961_v16, %v957_v15  ;;  %v616_v23 = vpop.f32.mrb[8].mxu0  ;;  %2126 = vmatpush1.bf16.msra.mxu0 %v4434_v8  ;;  %2512 = vmatpush1.bf16.msra.mxu1 %v4437_v9  ;;  %v959_v17 = vmax.f32 %v802_v5, 0.0  ;;  %v4473_v5 = vld [vmem:[%s5738_s3 + $0x2e8] ss:$16 sps:$4 sm:$0xff]  }
  0xfb   : > { %v617_v28 = vadd.f32 %v616_v23, %v4956_v41  ;;  %v618_v29 = vpop.f32.mrb[9].mxu0  ;;  %2127 = vmatprep.subr.bf16.mxu0 %v4442_v13  ;;  %2513 = vmatprep.subr.bf16.mxu1 %v4445_v14  ;;  %v804_v13 = vadd.f32 %v803_v7, %v4985_v6  ;;  %v805_v14 = vpop.f32.mrb[7].mxu1  ;;  %v4458_v23 = vld [vmem:[%s5738_s3 + $0x2a0] ss:$16 sps:$4 sm:$0xff]  }
  0xfc   : > { %v619_v34 = vadd.f32 %v618_v29, %v4960_v2  ;;  %v620_v35 = vpop.f32.mrb[10].mxu0  ;;  %1972 = vmatprep.mubr.bf16.mxu0 %v1081_v22  ;;  %2358 = vmatprep.mubr.bf16.mxu1 %v1081_v22  ;;  %v4469_v29 = vld [vmem:[%s5738_s3 + $0x2cc] ss:$16 sps:$4 sm:$0xff]  }
  0xfd   : > { %v621_v42 = vadd.f32 %v620_v35, %v4956_v41  ;;  %v622_v43 = vpop.f32.mrb[11].mxu0  ;;  %1973 = vmatmul.mubr.bf16.gmra.mrb[68].mxu0 %v1080_v18  ;;  %2359 = vmatmul.mubr.bf16.gmra.mrb[68].mxu1 %v1080_v18  ;;  %v964_v49 = vmax.f32 %v617_v28, 0.0  ;;  %v806_v18 = vadd.f32 %v805_v14, %v4996_v10  ;;  %v962_v21 = vmax.f32 %v804_v13, 0.0  ;;  %v4466_v28 = vld [vmem:[%s5738_s3 + $0x2c4] ss:$16 sps:$4 sm:$0xff]  }
  0xfe   : > { %v623_v45 = vadd.f32 %v622_v43, %v4960_v2  ;;  %2128 = vmatpush1.bf16.msra.mxu0 %v4440_v19  ;;  %2514 = vmatpush1.bf16.msra.mxu1 %v4443_v24  ;;  %v965_v54 = vmax.f32 %v619_v34, 0.0  ;;  %v4461_v24 = vld [vmem:[%s5738_s3 + $0x2a8] ss:$16 sps:$4 sm:$0xff]   ;;  %v809_v34 = vpop.f32.mrb[8].mxu1 }
  0xff   : > { %v968_v50 = vmax.f32 %v621_v42, 0.0  ;;  %2129 = vmatprep.subr.bf16.mxu0 %v4448_v25  ;;  %2515 = vmatprep.subr.bf16.mxu1 %v4451_v30  ;;  %v963_v25 = vmax.f32 %v806_v18, 0.0  ;;  %v5072_v30 = vpack.c.bf16 %v962_v21, %v958_v12  ;;  %v810_v39 = vadd.f32 %v809_v34, %v4985_v6  ;;  %v811_v42 = vpop.f32.mrb[9].mxu1  ;;  %v4481_v12 = vld [vmem:[%s5738_s3 + $0x30c] ss:$16 sps:$4 sm:$0xff]  }
 0x100   : > { %v969_v56 = vmax.f32 %v623_v45, 0.0  ;;  %v4467_v45 = vld [vmem:[%s5738_s3 + $0x2c8] ss:$16 sps:$4 sm:$0xff]   ;;  %v813_v48 = vpop.f32.mrb[10].mxu1 }
 0x101   : > { %v1084_v59 = vpack.c.bf16 %v968_v50, %v964_v49  ;;  %v5074_v33 = vpack.c.bf16 %v963_v25, %v959_v17  ;;  %v4484_v25 = vld [vmem:[%s5738_s3 + $0x324] ss:$16 sps:$4 sm:$0xff]  }
 0x102   : > { %v1085_v0 = vpack.c.bf16 %v969_v56, %v965_v54  ;;  %v626_v1 = vpop.f32.mrb[12].mxu0  ;;  %2130 = vmatpush1.bf16.msra.mxu0 %v4446_v46  ;;  %2516 = vmatpush1.bf16.msra.mxu1 %v4449_v47  ;;  %v4472_v46 = vld [vmem:[%s5738_s3 + $0x2e4] ss:$16 sps:$4 sm:$0xff]   ;;  %v812_v47 = vadd.f32 %v811_v42, %v4996_v10  ;;  %v814_v54 = vadd.f32 %v813_v48, %v4985_v6  ;;  %v815_v56 = vpop.f32.mrb[11].mxu1  ;;  %v4482_v48 = vld [vmem:[%s5738_s3 + $0x320] ss:$16 sps:$4 sm:$0xff]  }
 0x103   : > { %v627_v8 = vadd.f32 %v626_v1, %v4956_v41  ;;  %v628_v9 = vpop.f32.mrb[13].mxu0  ;;  %2131 = vmatprep.subr.bf16.mxu0 %v4454_v51  ;;  %2517 = vmatprep.subr.bf16.mxu1 %v4457_v52  ;;  %v4475_v51 = vld [vmem:[%s5738_s3 + $0x2ec] ss:$16 sps:$4 sm:$0xff]   ;;  %v966_v52 = vmax.f32 %v810_v39, 0.0  ;;  %v816_v62 = vadd.f32 %v815_v56, %v4996_v10 }
 0x104   : > { %v629_v15 = vadd.f32 %v628_v9, %v4960_v2  ;;  %v630_v16 = vpop.f32.mrb[14].mxu0  ;;  %1982 = vmatprep.mubr.bf16.mxu0 %v1085_v0  ;;  %2368 = vmatprep.mubr.bf16.mxu1 %v1085_v0  ;;  %v970_v1 = vmax.f32 %v814_v54, 0.0  ;;  %v819_v17 = vpop.f32.mrb[12].mxu1  ;;  %v4490_v54 = vld [vmem:[%s5738_s3 + $0x344] ss:$16 sps:$4 sm:$0xff]  }
 0x105   : > { %v631_v19 = vadd.f32 %v630_v16, %v4956_v41  ;;  %v632_v20 = vpop.f32.mrb[15].mxu0  ;;  %1983 = vmatmul.mubr.bf16.gmra.mrb[72].mxu0 %v1084_v59  ;;  %2369 = vmatmul.mubr.bf16.gmra.mrb[72].mxu1 %v1084_v59  ;;  %v972_v26 = vmax.f32 %v627_v8, 0.0  ;;  %v971_v7 = vmax.f32 %v816_v62, 0.0  ;;  %v821_v21 = vpop.f32.mrb[13].mxu1  ;;  %v4493_v56 = vld [vmem:[%s5738_s3 + $0x34c] ss:$16 sps:$4 sm:$0xff]  }
 0x106   : > { %v633_v22 = vadd.f32 %v632_v20, %v4960_v2  ;;  %2132 = vmatpush1.bf16.msra.mxu0 %v4452_v61  ;;  %2518 = vmatpush1.bf16.msra.mxu1 %v4455_v3  ;;  %v973_v31 = vmax.f32 %v629_v15, 0.0  ;;  %v967_v61 = vmax.f32 %v812_v47, 0.0  ;;  %v5108_v13 = vpack.c.bf16 %v970_v1, %v966_v52  ;;  %v4488_v1 = vld [vmem:[%s5738_s3 + $0x340] ss:$16 sps:$4 sm:$0xff]  }
 0x107   : > { %v976_v27 = vmax.f32 %v631_v19, 0.0  ;;  %2133 = vmatprep.subr.bf16.mxu0 %v4460_v4  ;;  %2519 = vmatprep.subr.bf16.mxu1 %v4463_v11  ;;  %v4470_v4 = vld [vmem:[%s5738_s3 + $0x2e0] ss:$16 sps:$4 sm:$0xff]   ;;  %v4478_v11 = vld [vmem:[%s5738_s3 + $0x304] ss:$16 sps:$4 sm:$0xff]   ;;  %v820_v20 = vadd.f32 %v819_v17, %v4985_v6 }
 0x108   : > { %v977_v32 = vmax.f32 %v633_v22, 0.0  ;;  %v5110_v16 = vpack.c.bf16 %v971_v7, %v967_v61  ;;  %v4476_v19 = vld [vmem:[%s5738_s3 + $0x300] ss:$16 sps:$4 sm:$0xff]   ;;  %v4499_v17 = vld [vmem:[%s5738_s3 + $0x36c] ss:$16 sps:$4 sm:$0xff]  }
 0x109   : > { %v1088_v35 = vpack.c.bf16 %v976_v27, %v972_v26  ;;  %v822_v26 = vadd.f32 %v821_v21, %v4996_v10  ;;  %v823_v27 = vpop.f32.mrb[14].mxu1 }
 0x10a   : > { %v1089_v43 = vpack.c.bf16 %v977_v32, %v973_v31  ;;  %v636_v44 = vpop.f32.mrb[16].mxu0  ;;  %2134 = vmatpush1.bf16.msra.mxu0 %v4458_v23  ;;  %2520 = vmatpush1.bf16.msra.mxu1 %v4461_v24  ;;  %v4479_v24 = vld [vmem:[%s5738_s3 + $0x308] ss:$16 sps:$4 sm:$0xff]   ;;  %v4487_v31 = vld [vmem:[%s5738_s3 + $0x32c] ss:$16 sps:$4 sm:$0xff]   ;;  %v974_v32 = vmax.f32 %v820_v20, 0.0  ;;  %v824_v34 = vadd.f32 %v823_v27, %v4985_v6 }
 0x10b   : > { %v637_v49 = vadd.f32 %v636_v44, %v4956_v41  ;;  %v638_v50 = vpop.f32.mrb[17].mxu0  ;;  %2135 = vmatprep.subr.bf16.mxu0 %v4466_v28  ;;  %2521 = vmatprep.subr.bf16.mxu1 %v4469_v29  ;;  %v975_v42 = vmax.f32 %v822_v26, 0.0 }
 0x10c   : > { %v639_v58 = vadd.f32 %v638_v50, %v4960_v2  ;;  %v640_v59 = vpop.f32.mrb[18].mxu0  ;;  %1992 = vmatprep.mubr.bf16.mxu0 %v1089_v43  ;;  %2378 = vmatprep.mubr.bf16.mxu1 %v1089_v43 }
 0x10d   : > { %v641_v63 = vadd.f32 %v640_v59, %v4956_v41  ;;  %v642_v0 = vpop.f32.mrb[19].mxu0  ;;  %1993 = vmatmul.mubr.bf16.gmra.mrb[76].mxu0 %v1088_v35  ;;  %2379 = vmatmul.mubr.bf16.gmra.mrb[76].mxu1 %v1088_v35  ;;  %v980_v8 = vmax.f32 %v637_v49, 0.0  ;;  %v825_v35 = vpop.f32.mrb[15].mxu1  ;;  %v4485_v49 = vld [vmem:[%s5738_s3 + $0x328] ss:$16 sps:$4 sm:$0xff]  }
 0x10e   : > { %v643_v3 = vadd.f32 %v642_v0, %v4960_v2  ;;  %2136 = vmatpush1.bf16.msra.mxu0 %v4464_v36  ;;  %2522 = vmatpush1.bf16.msra.mxu1 %v4467_v45  ;;  %v981_v14 = vmax.f32 %v639_v58, 0.0  ;;  %v826_v43 = vadd.f32 %v825_v35, %v4996_v10 }
 0x10f   : > { %v984_v9 = vmax.f32 %v641_v63, 0.0  ;;  %2137 = vmatprep.subr.bf16.mxu0 %v4472_v46  ;;  %2523 = vmatprep.subr.bf16.mxu1 %v4475_v51  ;;  %v978_v46 = vmax.f32 %v824_v34, 0.0  ;;  %v829_v63 = vpop.f32.mrb[16].mxu1 }
 0x110   : > { %v985_v15 = vmax.f32 %v643_v3, 0.0  ;;  %v979_v50 = vmax.f32 %v826_v43, 0.0  ;;  %v830_v3 = vadd.f32 %v829_v63, %v4985_v6 }
 0x111   : > { %v1092_v18 = vpack.c.bf16 %v984_v9, %v980_v8  ;;  %v5144_v58 = vpack.c.bf16 %v978_v46, %v974_v32  ;;  %v4491_v8 = vld [vmem:[%s5738_s3 + $0x348] ss:$16 sps:$4 sm:$0xff]   ;;  %v4496_v9 = vld [vmem:[%s5738_s3 + $0x364] ss:$16 sps:$4 sm:$0xff]  }
 0x112   : > { %v1093_v22 = vpack.c.bf16 %v985_v15, %v981_v14  ;;  %v646_v23 = vpop.f32.mrb[20].mxu0  ;;  %2138 = vmatpush1.bf16.msra.mxu0 %v4470_v4  ;;  %2524 = vmatpush1.bf16.msra.mxu1 %v4473_v5  ;;  %v5146_v62 = vpack.c.bf16 %v979_v50, %v975_v42  ;;  %v831_v4 = vpop.f32.mrb[17].mxu1 }
 0x113   : > { %v647_v28 = vadd.f32 %v646_v23, %v4956_v41  ;;  %v648_v29 = vpop.f32.mrb[21].mxu0  ;;  %2139 = vmatprep.subr.bf16.mxu0 %v4478_v11  ;;  %2525 = vmatprep.subr.bf16.mxu1 %v4481_v12  ;;  %v832_v11 = vadd.f32 %v831_v4, %v4996_v10  ;;  %v833_v12 = vpop.f32.mrb[18].mxu1 }
 0x114   : > { %v649_v36 = vadd.f32 %v648_v29, %v4960_v2  ;;  %v650_v39 = vpop.f32.mrb[22].mxu0  ;;  %2002 = vmatprep.mubr.bf16.mxu0 %v1093_v22  ;;  %2388 = vmatprep.mubr.bf16.mxu1 %v1093_v22  ;;  %v835_v20 = vpop.f32.mrb[19].mxu1  ;;  %v4494_v29 = vld [vmem:[%s5738_s3 + $0x360] ss:$16 sps:$4 sm:$0xff]  }
 0x115   : > { %v651_v44 = vadd.f32 %v650_v39, %v4956_v41  ;;  %v652_v45 = vpop.f32.mrb[23].mxu0  ;;  %2003 = vmatmul.mubr.bf16.gmra.mrb[80].mxu0 %v1092_v18  ;;  %2389 = vmatmul.mubr.bf16.gmra.mrb[80].mxu1 %v1092_v18  ;;  %v988_v51 = vmax.f32 %v647_v28, 0.0  ;;  %v982_v18 = vmax.f32 %v830_v3, 0.0  ;;  %v983_v23 = vmax.f32 %v832_v11, 0.0  ;;  %v4505_v39 = vld [vmem:[%s5738_s3 + $0x38c] ss:$16 sps:$4 sm:$0xff]  }
 0x116   : > { %v653_v47 = vadd.f32 %v652_v45, %v4960_v2  ;;  %2140 = vmatpush1.bf16.msra.mxu0 %v4476_v19  ;;  %2526 = vmatpush1.bf16.msra.mxu1 %v4479_v24  ;;  %v989_v59 = vmax.f32 %v649_v36, 0.0  ;;  %v834_v19 = vadd.f32 %v833_v12, %v4985_v6  ;;  %v836_v24 = vadd.f32 %v835_v20, %v4996_v10  ;;  %v4502_v36 = vld [vmem:[%s5738_s3 + $0x384] ss:$16 sps:$4 sm:$0xff]   ;;  %v839_v46 = vpop.f32.mrb[20].mxu1 }
 0x117   : > { %v992_v52 = vmax.f32 %v651_v44, 0.0  ;;  %2141 = vmatprep.subr.bf16.mxu0 %v4484_v25  ;;  %2527 = vmatprep.subr.bf16.mxu1 %v4487_v31  ;;  %v4497_v31 = vld [vmem:[%s5738_s3 + $0x368] ss:$16 sps:$4 sm:$0xff]   ;;  %v841_v50 = vpop.f32.mrb[21].mxu1 }
 0x118   : > { %v993_v61 = vmax.f32 %v653_v47, 0.0  ;;  %v986_v27 = vmax.f32 %v834_v19, 0.0  ;;  %v987_v32 = vmax.f32 %v836_v24, 0.0  ;;  %v4509_v19 = vld [vmem:[%s5738_s3 + $0x3a8] ss:$16 sps:$4 sm:$0xff]  }
 0x119   : > { %v1096_v0 = vpack.c.bf16 %v992_v52, %v988_v51  ;;  %v4517_v24 = vld [vmem:[%s5738_s3 + $0x3cc] ss:$16 sps:$4 sm:$0xff]  }
 0x11a   : > { %v1097_v5 = vpack.c.bf16 %v993_v61, %v989_v59  ;;  %v656_v7 = vpop.f32.mrb[24].mxu0  ;;  %2142 = vmatpush1.bf16.msra.mxu0 %v4482_v48  ;;  %2528 = vmatpush1.bf16.msra.mxu1 %v4485_v49  ;;  %v5180_v42 = vpack.c.bf16 %v986_v27, %v982_v18  ;;  %v5182_v45 = vpack.c.bf16 %v987_v32, %v983_v23  ;;  %v4500_v48 = vld [vmem:[%s5738_s3 + $0x380] ss:$16 sps:$4 sm:$0xff]   ;;  %v843_v61 = vpop.f32.mrb[22].mxu1  ;;  %v4514_v23 = vld [vmem:[%s5738_s3 + $0x3c4] ss:$16 sps:$4 sm:$0xff]  }
 0x11b   : > { %v657_v14 = vadd.f32 %v656_v7, %v4956_v41  ;;  %v658_v15 = vpop.f32.mrb[25].mxu0  ;;  %2143 = vmatprep.subr.bf16.mxu0 %v4490_v54  ;;  %2529 = vmatprep.subr.bf16.mxu1 %v4493_v56  ;;  %v840_v49 = vadd.f32 %v839_v46, %v4985_v6  ;;  %v4503_v54 = vld [vmem:[%s5738_s3 + $0x388] ss:$16 sps:$4 sm:$0xff]   ;;  %v4508_v56 = vld [vmem:[%s5738_s3 + $0x3a4] ss:$16 sps:$4 sm:$0xff]   ;;  %v842_v59 = vadd.f32 %v841_v50, %v4996_v10 }
 0x11c   : > { %v659_v21 = vadd.f32 %v658_v15, %v4960_v2  ;;  %v660_v22 = vpop.f32.mrb[26].mxu0  ;;  %2012 = vmatprep.mubr.bf16.mxu0 %v1097_v5  ;;  %2398 = vmatprep.mubr.bf16.mxu1 %v1097_v5  ;;  %v844_v4 = vadd.f32 %v843_v61, %v4985_v6  ;;  %v845_v5 = vpop.f32.mrb[23].mxu1  ;;  %v4506_v18 = vld [vmem:[%s5738_s3 + $0x3a0] ss:$16 sps:$4 sm:$0xff]   ;;  %v4523_v50 = vld [vmem:[%s5738_s3 + $0x3ec] ss:$16 sps:$4 sm:$0xff]  }
 0x11d   : > { %v661_v25 = vadd.f32 %v660_v22, %v4956_v41  ;;  %v662_v26 = vpop.f32.mrb[27].mxu0  ;;  %2013 = vmatmul.mubr.bf16.gmra.mrb[84].mxu0 %v1096_v0  ;;  %2399 = vmatmul.mubr.bf16.gmra.mrb[84].mxu1 %v1096_v0  ;;  %v996_v34 = vmax.f32 %v657_v14, 0.0  ;;  %v990_v3 = vmax.f32 %v840_v49, 0.0  ;;  %v846_v11 = vadd.f32 %v845_v5, %v4996_v10  ;;  %v4512_v32 = vld [vmem:[%s5738_s3 + $0x3c0] ss:$16 sps:$4 sm:$0xff]  }
 0x11e   : > { %v663_v28 = vadd.f32 %v662_v26, %v4960_v2  ;;  %2144 = vmatpush1.bf16.msra.mxu0 %v4488_v1  ;;  %2530 = vmatpush1.bf16.msra.mxu1 %v4491_v8  ;;  %v997_v43 = vmax.f32 %v659_v21, 0.0  ;;  %v4511_v1 = vld [vmem:[%s5738_s3 + $0x3ac] ss:$16 sps:$4 sm:$0xff]   ;;  %v994_v15 = vmax.f32 %v844_v4, 0.0  ;;  %v4518_v5 = vld [vmem:[%s5738_s3 + $0x3e0] ss:$16 sps:$4 sm:$0xff]  }
 0x11f   : > { %v1000_v35 = vmax.f32 %v661_v25, 0.0  ;;  %2145 = vmatprep.subr.bf16.mxu0 %v4496_v9  ;;  %2531 = vmatprep.subr.bf16.mxu1 %v4499_v17  ;;  %v991_v9 = vmax.f32 %v842_v59, 0.0  ;;  %v995_v20 = vmax.f32 %v846_v11, 0.0 }
 0x120   : > { %v1001_v44 = vmax.f32 %v663_v28, 0.0  ;;  %v5216_v25 = vpack.c.bf16 %v994_v15, %v990_v3 }
 0x121   : > { %v1100_v47 = vpack.c.bf16 %v1000_v35, %v996_v34  ;;  %v5218_v28 = vpack.c.bf16 %v995_v20, %v991_v9 }
 0x122   : > { %v1101_v51 = vpack.c.bf16 %v1001_v44, %v997_v43  ;;  %v666_v52 = vpop.f32.mrb[28].mxu0  ;;  %2146 = vmatpush1.bf16.msra.mxu0 %v4494_v29  ;;  %2532 = vmatpush1.bf16.msra.mxu1 %v4497_v31  ;;  %v849_v29 = vpop.f32.mrb[24].mxu1  ;;  %v4515_v43 = vld [vmem:[%s5738_s3 + $0x3c8] ss:$16 sps:$4 sm:$0xff]   ;;  %v4520_v44 = vld [vmem:[%s5738_s3 + $0x3e4] ss:$16 sps:$4 sm:$0xff]  }
 0x123   : > { %v667_v63 = vadd.f32 %v666_v52, %v4956_v41  ;;  %v668_v0 = vpop.f32.mrb[29].mxu0  ;;  %2147 = vmatprep.subr.bf16.mxu0 %v4502_v36  ;;  %2533 = vmatprep.subr.bf16.mxu1 %v4505_v39  ;;  %v850_v34 = vadd.f32 %v849_v29, %v4985_v6  ;;  %v851_v35 = vpop.f32.mrb[25].mxu1 }
 0x124   : > { %v669_v7 = vadd.f32 %v668_v0, %v4960_v2  ;;  %v670_v8 = vpop.f32.mrb[30].mxu0  ;;  %2022 = vmatprep.mubr.bf16.mxu0 %v1101_v51  ;;  %2408 = vmatprep.mubr.bf16.mxu1 %v1101_v51  ;;  %v852_v46 = vadd.f32 %v851_v35, %v4996_v10 }
 0x125   : > { %v671_v12 = vadd.f32 %v670_v8, %v4956_v41  ;;  %v672_v14 = vpop.f32.mrb[31].mxu0  ;;  %2023 = vmatmul.mubr.bf16.gmra.mrb[88].mxu0 %v1100_v47  ;;  %2409 = vmatmul.mubr.bf16.gmra.mrb[88].mxu1 %v1100_v47  ;;  %v1004_v21 = vmax.f32 %v667_v63, 0.0  ;;  %v853_v47 = vpop.f32.mrb[26].mxu1  ;;  %v998_v51 = vmax.f32 %v850_v34, 0.0 }
 0x126   : > { %v673_v17 = vadd.f32 %v672_v14, %v4960_v2  ;;  %2148 = vmatpush1.bf16.msra.mxu0 %v4500_v48  ;;  %2534 = vmatpush1.bf16.msra.mxu1 %v4503_v54  ;;  %v1005_v26 = vmax.f32 %v669_v7, 0.0  ;;  %v854_v52 = vadd.f32 %v853_v47, %v4985_v6  ;;  %v855_v54 = vpop.f32.mrb[27].mxu1  ;;  %v999_v61 = vmax.f32 %v852_v46, 0.0  ;;  %v4521_v7 = vld [vmem:[%s5738_s3 + $0x3e8] ss:$16 sps:$4 sm:$0xff]  }
 0x127   : > { %v1008_v22 = vmax.f32 %v671_v12, 0.0  ;;  %2149 = vmatprep.subr.bf16.mxu0 %v4508_v56  ;;  %2535 = vmatprep.subr.bf16.mxu1 %v4511_v1  ;;  %v856_v63 = vadd.f32 %v855_v54, %v4996_v10 }
 0x128   : > { %v1009_v27 = vmax.f32 %v673_v17, 0.0  ;;  %v1002_v3 = vmax.f32 %v854_v52, 0.0 }
 0x129   : > { %v1104_v31 = vpack.c.bf16 %v1008_v22, %v1004_v21  ;;  %v1003_v8 = vmax.f32 %v856_v63, 0.0 }
 0x12a   : > { %v1105_v36 = vpack.c.bf16 %v1009_v27, %v1005_v26  ;;  %v676_v39 = vpop.f32.mrb[32].mxu0  ;;  %2150 = vmatpush1.bf16.msra.mxu0 %v4506_v18  ;;  %2536 = vmatpush1.bf16.msra.mxu1 %v4509_v19  ;;  %v5246_v12 = vpack.c.bf16 %v1002_v3, %v998_v51  ;;  %v859_v18 = vpop.f32.mrb[28].mxu1 }
 0x12b   : > { %v677_v48 = vadd.f32 %v676_v39, %v4956_v41  ;;  %v678_v49 = vpop.f32.mrb[33].mxu0  ;;  %2151 = vmatprep.subr.bf16.mxu0 %v4514_v23  ;;  %2537 = vmatprep.subr.bf16.mxu1 %v4517_v24  ;;  %v5248_v17 = vpack.c.bf16 %v1003_v8, %v999_v61  ;;  %v860_v20 = vadd.f32 %v859_v18, %v4985_v6  ;;  %v861_v21 = vpop.f32.mrb[29].mxu1 }
 0x12c   : > { %v679_v56 = vadd.f32 %v678_v49, %v4960_v2  ;;  %v680_v59 = vpop.f32.mrb[34].mxu0  ;;  %2032 = vmatprep.mubr.bf16.mxu0 %v1105_v36  ;;  %2418 = vmatprep.mubr.bf16.mxu1 %v1105_v36  ;;  %v862_v24 = vadd.f32 %v861_v21, %v4996_v10  ;;  %v863_v26 = vpop.f32.mrb[30].mxu1 }
 0x12d   : > { %v681_v0 = vadd.f32 %v680_v59, %v4956_v41  ;;  %v682_v1 = vpop.f32.mrb[35].mxu0  ;;  %2033 = vmatmul.mubr.bf16.gmra.mrb[92].mxu0 %v1104_v31  ;;  %2419 = vmatmul.mubr.bf16.gmra.mrb[92].mxu1 %v1104_v31  ;;  %v1012_v9 = vmax.f32 %v677_v48, 0.0  ;;  %v1006_v31 = vmax.f32 %v860_v20, 0.0  ;;  %v865_v34 = vpop.f32.mrb[31].mxu1 }
 0x12e   : > { %v683_v4 = vadd.f32 %v682_v1, %v4960_v2  ;;  %2152 = vmatpush1.bf16.msra.mxu0 %v4512_v32  ;;  %2538 = vmatpush1.bf16.msra.mxu1 %v4515_v43  ;;  %v1013_v14 = vmax.f32 %v679_v56, 0.0  ;;  %v864_v32 = vadd.f32 %v863_v26, %v4985_v6  ;;  %v1007_v39 = vmax.f32 %v862_v24, 0.0  ;;  %v869_v61 = vpop.f32.mrb[32].mxu1 }
 0x12f   : > { %v1016_v11 = vmax.f32 %v681_v0, 0.0  ;;  %2153 = vmatprep.subr.bf16.mxu0 %v4520_v44  ;;  %2539 = vmatprep.subr.bf16.mxu1 %v4523_v50  ;;  %v866_v43 = vadd.f32 %v865_v34, %v4996_v10  ;;  %v870_v0 = vadd.f32 %v869_v61, %v4985_v6  ;;  %v871_v1 = vpop.f32.mrb[33].mxu1 }
 0x130   : > { %v1017_v15 = vmax.f32 %v683_v4, 0.0  ;;  %v1010_v47 = vmax.f32 %v864_v32, 0.0 }
 0x131   : > { %v1108_v19 = vpack.c.bf16 %v1016_v11, %v1012_v9  ;;  %v1011_v49 = vmax.f32 %v866_v43, 0.0  ;;  %v1014_v11 = vmax.f32 %v870_v0, 0.0 }
 0x132   : > { %v1109_v22 = vpack.c.bf16 %v1017_v15, %v1013_v14  ;;  %v686_v23 = vpop.f32.mrb[36].mxu0  ;;  %2154 = vmatpush1.bf16.msra.mxu0 %v4518_v5  ;;  %2540 = vmatpush1.bf16.msra.mxu1 %v4521_v7  ;;  %v5258_v52 = vpack.c.bf16 %v1010_v47, %v1006_v31  ;;  %v872_v5 = vadd.f32 %v871_v1, %v4996_v10  ;;  %v873_v7 = vpop.f32.mrb[34].mxu1 }
 0x133   : > { %v687_v27 = vadd.f32 %v686_v23, %v4956_v41  ;;  %v688_v29 = vpop.f32.mrb[37].mxu0  ;;  %v5260_v59 = vpack.c.bf16 %v1011_v49, %v1007_v39  ;;  %v874_v14 = vadd.f32 %v873_v7, %v4985_v6  ;;  %v875_v15 = vpop.f32.mrb[35].mxu1 }
 0x134   : > { %v689_v35 = vadd.f32 %v688_v29, %v4960_v2  ;;  %v690_v36 = vpop.f32.mrb[38].mxu0  ;;  %2042 = vmatprep.mubr.bf16.mxu0 %v1109_v22  ;;  %2428 = vmatprep.mubr.bf16.mxu1 %v1109_v22  ;;  %v1015_v20 = vmax.f32 %v872_v5, 0.0  ;;  %v876_v21 = vadd.f32 %v875_v15, %v4996_v10  ;;  %v879_v39 = vpop.f32.mrb[36].mxu1 }
 0x135   : > { %v691_v44 = vadd.f32 %v690_v36, %v4956_v41  ;;  %v692_v46 = vpop.f32.mrb[39].mxu0  ;;  %2043 = vmatmul.mubr.bf16.gmra.mrb[96].mxu0 %v1108_v19  ;;  %2429 = vmatmul.mubr.bf16.gmra.mrb[96].mxu1 %v1108_v19  ;;  %v1020_v50 = vmax.f32 %v687_v27, 0.0  ;;  %v1018_v24 = vmax.f32 %v874_v14, 0.0 }
 0x136   : > { %v693_v48 = vadd.f32 %v692_v46, %v4960_v2  ;;  %v1021_v54 = vmax.f32 %v689_v35, 0.0  ;;  %v1019_v27 = vmax.f32 %v876_v21, 0.0  ;;  %v881_v46 = vpop.f32.mrb[37].mxu1 }
 0x137   : > { %v1024_v51 = vmax.f32 %v691_v44, 0.0  ;;  %v5270_v32 = vpack.c.bf16 %v1018_v24, %v1014_v11  ;;  %v880_v44 = vadd.f32 %v879_v39, %v4985_v6  ;;  %v882_v49 = vadd.f32 %v881_v46, %v4996_v10 }
 0x138   : > { %v1025_v56 = vmax.f32 %v693_v48, 0.0  ;;  %v5272_v36 = vpack.c.bf16 %v1019_v27, %v1015_v20 }
 0x139   : > { %v1112_v63 = vpack.c.bf16 %v1024_v51, %v1020_v50  ;;  %v883_v50 = vpop.f32.mrb[38].mxu1 }
 0x13a   : > { %v1113_v3 = vpack.c.bf16 %v1025_v56, %v1021_v54  ;;  %v696_v4 = vpop.f32.mrb[40].mxu0  ;;  %v1022_v56 = vmax.f32 %v880_v44, 0.0  ;;  %v884_v61 = vadd.f32 %v883_v50, %v4985_v6 }
 0x13b   : > { %v697_v8 = vadd.f32 %v696_v4, %v4956_v41  ;;  %v698_v9 = vpop.f32.mrb[41].mxu0 }
 0x13c   : > { %v699_v18 = vadd.f32 %v698_v9, %v4960_v2  ;;  %v700_v19 = vpop.f32.mrb[42].mxu0  ;;  %2052 = vmatprep.mubr.bf16.mxu0 %v1113_v3  ;;  %2438 = vmatprep.mubr.bf16.mxu1 %v1113_v3  ;;  %v1023_v3 = vmax.f32 %v882_v49, 0.0 }
 0x13d   : > { %v701_v22 = vadd.f32 %v700_v19, %v4956_v41  ;;  %v702_v23 = vpop.f32.mrb[43].mxu0  ;;  %2053 = vmatmul.mubr.bf16.gmra.mrb[100].mxu0 %v1112_v63  ;;  %2439 = vmatmul.mubr.bf16.gmra.mrb[100].mxu1 %v1112_v63  ;;  %v1028_v29 = vmax.f32 %v697_v8, 0.0  ;;  %v885_v63 = vpop.f32.mrb[39].mxu1  ;;  %v1026_v8 = vmax.f32 %v884_v61, 0.0 }
 0x13e   : > { %v703_v26 = vadd.f32 %v702_v23, %v4960_v2  ;;  %v1029_v34 = vmax.f32 %v699_v18, 0.0  ;;  %v886_v4 = vadd.f32 %v885_v63, %v4996_v10 }
 0x13f   : > { %v1032_v31 = vmax.f32 %v701_v22, 0.0  ;;  %v5282_v18 = vpack.c.bf16 %v1026_v8, %v1022_v56  ;;  %v889_v22 = vpop.f32.mrb[40].mxu1 }
 0x140   : > { %v1033_v35 = vmax.f32 %v703_v26, 0.0  ;;  %v1027_v11 = vmax.f32 %v886_v4, 0.0  ;;  %v890_v24 = vadd.f32 %v889_v22, %v4985_v6  ;;  %v891_v26 = vpop.f32.mrb[41].mxu1 }
 0x141   : > { %v1116_v43 = vpack.c.bf16 %v1032_v31, %v1028_v29  ;;  %v892_v31 = vadd.f32 %v891_v26, %v4996_v10 }
 0x142   : > { %v1117_v47 = vpack.c.bf16 %v1033_v35, %v1029_v34  ;;  %v706_v48 = vpop.f32.mrb[44].mxu0  ;;  %v5284_v21 = vpack.c.bf16 %v1027_v11, %v1023_v3  ;;  %v893_v34 = vpop.f32.mrb[42].mxu1 }
 0x143   : > { %v707_v51 = vadd.f32 %v706_v48, %v4956_v41  ;;  %v708_v54 = vpop.f32.mrb[45].mxu0  ;;  %v894_v44 = vadd.f32 %v893_v34, %v4985_v6  ;;  %v895_v46 = vpop.f32.mrb[43].mxu1  ;;  %v1031_v49 = vmax.f32 %v892_v31, 0.0 }
 0x144   : > { %v709_v0 = vadd.f32 %v708_v54, %v4960_v2  ;;  %v710_v1 = vpop.f32.mrb[46].mxu0  ;;  %2062 = vmatprep.mubr.bf16.mxu0 %v1117_v47  ;;  %2448 = vmatprep.mubr.bf16.mxu1 %v1117_v47  ;;  %v896_v50 = vadd.f32 %v895_v46, %v4996_v10  ;;  %v899_v11 = vpop.f32.mrb[44].mxu1 }
 0x145   : > { %v711_v5 = vadd.f32 %v710_v1, %v4956_v41  ;;  %v712_v7 = vpop.f32.mrb[47].mxu0  ;;  %2063 = vmatmul.mubr.bf16.gmra.mrb[104].mxu0 %v1116_v43  ;;  %2449 = vmatmul.mubr.bf16.gmra.mrb[104].mxu1 %v1116_v43  ;;  %v1036_v14 = vmax.f32 %v707_v51, 0.0  ;;  %v1030_v43 = vmax.f32 %v890_v24, 0.0  ;;  %v1034_v56 = vmax.f32 %v894_v44, 0.0  ;;  %v4526_v1 = vld [vmem:[%s5740_s5 + $0xc0] sm:$0xff]  }
 0x146   : > { %v713_v9 = vadd.f32 %v712_v7, %v4960_v2  ;;  %v1037_v19 = vmax.f32 %v709_v0, 0.0  ;;  %v1035_v63 = vmax.f32 %v896_v50, 0.0  ;;  %v4524_v0 = vld [vmem:[%s5740_s5 + $0x40] sm:$0xff]   ;;  %3915 = vmatprep.subr.bf16.mxu1 %v4526_v1 }
 0x147   : > { %v1040_v15 = vmax.f32 %v711_v5, 0.0  ;;  %v5300_v5 = vpack.c.bf16 %v1034_v56, %v1030_v43  ;;  %3803 = vmatprep.subr.bf16.mxu0 %v4524_v0 }
 0x148   : > { %v1041_v20 = vmax.f32 %v713_v9, 0.0  ;;  %v5302_v9 = vpack.c.bf16 %v1035_v63, %v1031_v49 }
 0x149   : > { %v1120_v23 = vpack.c.bf16 %v1040_v15, %v1036_v14  ;;  %v900_v15 = vadd.f32 %v899_v11, %v4985_v6 }
 0x14a   : > { %v1121_v27 = vpack.c.bf16 %v1041_v20, %v1037_v19  ;;  %v716_v29 = vpop.f32.mrb[48].mxu0  ;;  %v901_v19 = vpop.f32.mrb[45].mxu1 }
 0x14b   : > { %v717_v35 = vadd.f32 %v716_v29, %v4956_v41  ;;  %v718_v39 = vpop.f32.mrb[49].mxu0  ;;  %v903_v24 = vpop.f32.mrb[46].mxu1  ;;  %v1038_v29 = vmax.f32 %v900_v15, 0.0 }
 0x14c   : > { %v719_v47 = vadd.f32 %v718_v39, %v4960_v2  ;;  %v720_v48 = vpop.f32.mrb[50].mxu0  ;;  %2072 = vmatprep.mubr.bf16.mxu0 %v1121_v27  ;;  %2458 = vmatprep.mubr.bf16.mxu1 %v1121_v27  ;;  %v904_v31 = vadd.f32 %v903_v24, %v4985_v6  ;;  %v905_v34 = vpop.f32.mrb[47].mxu1 }
 0x14d   : > { %v721_v51 = vadd.f32 %v720_v48, %v4956_v41  ;;  %v722_v54 = vpop.f32.mrb[51].mxu0  ;;  %2073 = vmatmul.mubr.bf16.gmra.mrb[108].mxu0 %v1120_v23  ;;  %2459 = vmatmul.mubr.bf16.gmra.mrb[108].mxu1 %v1120_v23  ;;  %v1044_v3 = vmax.f32 %v717_v35, 0.0  ;;  %v902_v23 = vadd.f32 %v901_v19, %v4996_v10  ;;  %v906_v44 = vadd.f32 %v905_v34, %v4996_v10  ;;  %v909_v1 = vpop.f32.mrb[48].mxu1 }
 0x14e   : > { %v723_v61 = vadd.f32 %v722_v54, %v4960_v2  ;;  %v1045_v7 = vmax.f32 %v719_v47, 0.0  ;;  %v1042_v48 = vmax.f32 %v904_v31, 0.0 }
 0x14f   : > { %v1048_v4 = vmax.f32 %v721_v51, 0.0  ;;  %v1039_v43 = vmax.f32 %v902_v23, 0.0  ;;  %v1043_v50 = vmax.f32 %v906_v44, 0.0 }
 0x150   : > { %v1049_v8 = vmax.f32 %v723_v61, 0.0  ;;  %v5312_v56 = vpack.c.bf16 %v1042_v48, %v1038_v29 }
 0x151   : > { %v1124_v14 = vpack.c.bf16 %v1048_v4, %v1044_v3  ;;  %v5314_v0 = vpack.c.bf16 %v1043_v50, %v1039_v43  ;;  %v910_v4 = vadd.f32 %v909_v1, %v4985_v6 }
 0x152   : > { %v1125_v20 = vpack.c.bf16 %v1049_v8, %v1045_v7  ;;  %v726_v22 = vpop.f32.mrb[52].mxu0  ;;  %v911_v7 = vpop.f32.mrb[49].mxu1 }
 0x153   : > { %v727_v26 = vadd.f32 %v726_v22, %v4956_v41  ;;  %v728_v27 = vpop.f32.mrb[53].mxu0  ;;  %v913_v15 = vpop.f32.mrb[50].mxu1  ;;  %v1046_v22 = vmax.f32 %v910_v4, 0.0 }
 0x154   : > { %v729_v35 = vadd.f32 %v728_v27, %v4960_v2  ;;  %v730_v39 = vpop.f32.mrb[54].mxu0  ;;  %2082 = vmatprep.mubr.bf16.mxu0 %v1125_v20  ;;  %2468 = vmatprep.mubr.bf16.mxu1 %v1125_v20  ;;  %v914_v23 = vadd.f32 %v913_v15, %v4985_v6  ;;  %v915_v24 = vpop.f32.mrb[51].mxu1 }
 0x155   : > { %v731_v46 = vadd.f32 %v730_v39, %v4956_v41  ;;  %v732_v47 = vpop.f32.mrb[55].mxu0  ;;  %2083 = vmatmul.mubr.bf16.gmra.mrb[112].mxu0 %v1124_v14  ;;  %2469 = vmatmul.mubr.bf16.gmra.mrb[112].mxu1 %v1124_v14  ;;  %v1052_v51 = vmax.f32 %v727_v26, 0.0  ;;  %v912_v14 = vadd.f32 %v911_v7, %v4996_v10  ;;  %v916_v31 = vadd.f32 %v915_v24, %v4996_v10 }
 0x156   : > { %v733_v49 = vadd.f32 %v732_v47, %v4960_v2  ;;  %v1053_v61 = vmax.f32 %v729_v35, 0.0  ;;  %v1050_v39 = vmax.f32 %v914_v23, 0.0 }
 0x157   : > { %v1056_v54 = vmax.f32 %v731_v46, 0.0  ;;  %v1047_v29 = vmax.f32 %v912_v14, 0.0  ;;  %v1051_v44 = vmax.f32 %v916_v31, 0.0 }
 0x158   : > { %v1057_v63 = vmax.f32 %v733_v49, 0.0  ;;  %v5324_v48 = vpack.c.bf16 %v1050_v39, %v1046_v22 }
 0x159   : > { %v1128_v3 = vpack.c.bf16 %v1056_v54, %v1052_v51  ;;  %v5326_v51 = vpack.c.bf16 %v1051_v44, %v1047_v29  ;;  %v919_v54 = vpop.f32.mrb[52].mxu1 }
 0x15a   : > { %v1129_v8 = vpack.c.bf16 %v1057_v63, %v1053_v61  ;;  %v736_v11 = vpop.f32.mrb[56].mxu0  ;;  %v920_v63 = vadd.f32 %v919_v54, %v4985_v6  ;;  %v921_v1 = vpop.f32.mrb[53].mxu1 }
 0x15b   : > { %v737_v19 = vadd.f32 %v736_v11, %v4956_v41  ;;  %v738_v20 = vpop.f32.mrb[57].mxu0 }
 0x15c   : > { %v739_v26 = vadd.f32 %v738_v20, %v4960_v2  ;;  %v740_v27 = vpop.f32.mrb[58].mxu0  ;;  %2092 = vmatprep.mubr.bf16.mxu0 %v1129_v8  ;;  %2478 = vmatprep.mubr.bf16.mxu1 %v1129_v8  ;;  %v923_v8 = vpop.f32.mrb[54].mxu1  ;;  %v1054_v15 = vmax.f32 %v920_v63, 0.0 }
 0x15d   : > { %v741_v34 = vadd.f32 %v740_v27, %v4956_v41  ;;  %v742_v35 = vpop.f32.mrb[59].mxu0  ;;  %2093 = vmatmul.mubr.bf16.gmra.mrb[116].mxu0 %v1128_v3  ;;  %2479 = vmatmul.mubr.bf16.gmra.mrb[116].mxu1 %v1128_v3  ;;  %v1060_v46 = vmax.f32 %v737_v19, 0.0  ;;  %v922_v3 = vadd.f32 %v921_v1, %v4996_v10  ;;  %v924_v19 = vadd.f32 %v923_v8, %v4985_v6  ;;  %v925_v20 = vpop.f32.mrb[55].mxu1 }
 0x15e   : > { %v743_v43 = vadd.f32 %v742_v35, %v4960_v2  ;;  %v1061_v49 = vmax.f32 %v739_v26, 0.0  ;;  %v926_v26 = vadd.f32 %v925_v20, %v4996_v10 }
 0x15f   : > { %v1064_v47 = vmax.f32 %v741_v34, 0.0  ;;  %v1055_v24 = vmax.f32 %v922_v3, 0.0  ;;  %v1058_v31 = vmax.f32 %v924_v19, 0.0 }
 0x160   : > { %v1065_v50 = vmax.f32 %v743_v43, 0.0  ;;  %v1059_v35 = vmax.f32 %v926_v26, 0.0 }
 0x161   : > { %v1132_v61 = vpack.c.bf16 %v1064_v47, %v1060_v46  ;;  %v5336_v44 = vpack.c.bf16 %v1058_v31, %v1054_v15 }
 0x162   : > { %v1133_v4 = vpack.c.bf16 %v1065_v50, %v1061_v49  ;;  %v746_v7 = vpop.f32.mrb[60].mxu0  ;;  %v5338_v49 = vpack.c.bf16 %v1059_v35, %v1055_v24  ;;  %v929_v50 = vpop.f32.mrb[56].mxu1  ;;  %v4527_v35 = vld [vmem:[%s5740_s5 + $0x80] sm:$0xff]  }
 0x163   : > { %v747_v11 = vadd.f32 %v746_v7, %v4956_v41  ;;  %v748_v14 = vpop.f32.mrb[61].mxu0  ;;  %v930_v63 = vadd.f32 %v929_v50, %v4985_v6 }
 0x164   : > { %v749_v22 = vadd.f32 %v748_v14, %v4960_v2  ;;  %v750_v23 = vpop.f32.mrb[62].mxu0  ;;  %2102 = vmatprep.mubr.bf16.mxu0 %v1133_v4  ;;  %2488 = vmatprep.mubr.bf16.mxu1 %v1133_v4 }
 0x165   : > { %v751_v27 = vadd.f32 %v750_v23, %v4956_v41  ;;  %v752_v29 = vpop.f32.mrb[63].mxu0  ;;  %2103 = vmatmul.mubr.bf16.gmra.mrb[120].mxu0 %v1132_v61  ;;  %2489 = vmatmul.mubr.bf16.gmra.mrb[120].mxu1 %v1132_v61  ;;  %v1068_v39 = vmax.f32 %v747_v11, 0.0  ;;  %v931_v41 = vpop.f32.mrb[57].mxu1  ;;  %v1062_v7 = vmax.f32 %v930_v63, 0.0  ;;  %v4531_v63 = vld [vmem:[%s5740_s5 + $0x88] sm:$0xff]  }
 0x166   : > { %v753_v34 = vadd.f32 %v752_v29, %v4960_v2  ;;  %v1069_v46 = vmax.f32 %v749_v22, 0.0  ;;  %v932_v61 = vadd.f32 %v931_v41, %v4996_v10  ;;  %v933_v4 = vpop.f32.mrb[58].mxu1 }
 0x167   : > { %v1072_v43 = vmax.f32 %v751_v27, 0.0  ;;  %v934_v2 = vadd.f32 %v933_v4, %v4985_v6  ;;  %v935_v3 = vpop.f32.mrb[59].mxu1  ;;  %v4536_v4 = vld [vmem:[%s5740_s5 + $0x58] sm:$0xff]  }
 0x168   : > { %v1073_v47 = vmax.f32 %v753_v34, 0.0  ;;  %v1063_v8 = vmax.f32 %v932_v61, 0.0  ;;  %v936_v11 = vadd.f32 %v935_v3, %v4996_v10  ;;  %v939_v22 = vpop.f32.mrb[60].mxu1  ;;  %v4535_v61 = vld [vmem:[%s5740_s5 + $0x90] sm:$0xff]   ;;  %v4539_v3 = vld [vmem:[%s5740_s5 + $0x98] sm:$0xff]  }
 0x169   : > { %v1136_v54 = vpack.c.bf16 %v1072_v43, %v1068_v39  ;;  %v1066_v14 = vmax.f32 %v934_v2, 0.0  ;;  %v940_v23 = vadd.f32 %v939_v22, %v4985_v6  ;;  %v941_v24 = vpop.f32.mrb[61].mxu1  ;;  %v4537_v2 = vld [vmem:[%s5740_s5 + $0x18] sm:$0xff]   ;;  %v4545_v22 = vld [vmem:[%s5740_s5 + $0x28] sm:$0xff]  }
 0x16a   : > { %v1137_v1 = vpack.c.bf16 %v1073_v47, %v1069_v46  ;;  %v1067_v15 = vmax.f32 %v936_v11, 0.0  ;;  %v942_v26 = vadd.f32 %v941_v24, %v4996_v10  ;;  %v943_v27 = vpop.f32.mrb[62].mxu1  ;;  %v4528_v46 = vld [vmem:[%s5740_s5 + $0x48] sm:$0xff]   ;;  %v4543_v11 = vld [vmem:[%s5740_s5 + $0xa0] sm:$0xff]   ;;  %v4549_v24 = vld [vmem:[%s5740_s5 + $0x30] sm:$0xff]  }
 0x16b   : > { %v5346_v19 = vpack.c.bf16 %v1066_v14, %v1062_v7  ;;  %v1070_v29 = vmax.f32 %v940_v23, 0.0  ;;  %v944_v31 = vadd.f32 %v943_v27, %v4985_v6  ;;  %v945_v34 = vpop.f32.mrb[63].mxu1  ;;  %v4530_v6 = vld [vmem:[%s5740_s5 + $0xc8] sm:$0xff]   ;;  %v4538_v7 = vld [vmem:[%s5740_s5 + $0xd8] sm:$0xff]  }
 0x16c   : > { %2112 = vmatprep.mubr.bf16.mxu0 %v1137_v1  ;;  %2498 = vmatprep.mubr.bf16.mxu1 %v1137_v1  ;;  %v5348_v20 = vpack.c.bf16 %v1067_v15, %v1063_v8  ;;  %v1071_v39 = vmax.f32 %v942_v26, 0.0  ;;  %v946_v43 = vadd.f32 %v945_v34, %v4996_v10  ;;  %v4529_v10 = vld [vmem:[%s5740_s5 + $0x8] sm:$0xff]   ;;  %v4533_v1 = vld [vmem:[%s5740_s5 + $0x10] sm:$0xff]   ;;  %v4541_v8 = vld [vmem:[%s5740_s5 + $0x20] sm:$0xff]  }
 0x16d   : > { %2113 = vmatmul.mubr.bf16.gmra.mrb[124].mxu0 %v1136_v54  ;;  %2499 = vmatmul.mubr.bf16.gmra.mrb[124].mxu1 %v1136_v54  ;;  %v1074_v47 = vmax.f32 %v944_v31, 0.0  ;;  %v4544_v14 = vld [vmem:[%s5740_s5 + $0x68] sm:$0xff]   ;;  %v4551_v26 = vld [vmem:[%s5740_s5 + $0xb0] sm:$0xff]   ;;  %v4552_v27 = vld [vmem:[%s5740_s5 + $0x78] sm:$0xff]  }
 0x16e   : > { %2155 = vmatprep.mubr.bf16.mxu0 %v5038_v57  ;;  %2541 = vmatprep.mubr.bf16.mxu1 %v5038_v57  ;;  %v4525_v57 = vld [vmem:[%s5740_s5] sm:$0xff]   ;;  %v1075_v50 = vmax.f32 %v946_v43, 0.0  ;;  %v4546_v15 = vld [vmem:[%s5740_s5 + $0xe8] sm:$0xff]   ;;  %v4553_v31 = vld [vmem:[%s5740_s5 + $0x38] sm:$0xff]  }
 0x16f   : > { %v5370_v54 = vpack.c.bf16 %v1074_v47, %v1070_v29  ;;  %v4547_v23 = vld [vmem:[%s5740_s5 + $0xa8] sm:$0xff]   ;;  %v4554_v29 = vld [vmem:[%s5740_s5 + $0xf8] sm:$0xff]  }
 0x170   : > { %v5378_v41 = vpack.c.bf16 %v1075_v50, %v1071_v39  ;;  %v4555_v34 = vld [vmem:[%s5740_s5 + $0xb8] sm:$0xff]  }
 0x175   : > { %2156 = vmatmul.mubr.bf16.vlgmr.msra.gmra.mrb[64].mxu0 %v5036_v53  ;;  %2542 = vmatmul.mubr.bf16.vlgmr.msra.gmra.mrb[64].mxu1 %v5036_v53  ;;  %v4532_v53 = vld [vmem:[%s5740_s5 + $0x50] sm:$0xff]  }
 0x176   : > { %2165 = vmatprep.mubr.bf16.mxu0 %v5074_v33  ;;  %2551 = vmatprep.mubr.bf16.mxu1 %v5074_v33  ;;  %v4534_v33 = vld [vmem:[%s5740_s5 + $0xd0] sm:$0xff]  }
 0x177   : > { %3804 = vmatpush3.bf16.msra.mxu0 %v4525_v57  ;;  %3916 = vmatpush3.bf16.msra.mxu1 %v4527_v35 }
 0x178   : > { %3805 = vmatprep.subr.bf16.mxu0 %v4528_v46  ;;  %3917 = vmatprep.subr.bf16.mxu1 %v4530_v6 }
 0x17b   : > { %3806 = vmatpush3.bf16.msra.mxu0 %v4529_v10  ;;  %3918 = vmatpush3.bf16.msra.mxu1 %v4531_v63 }
 0x17c   : > { %3807 = vmatprep.subr.bf16.mxu0 %v4532_v53  ;;  %3919 = vmatprep.subr.bf16.mxu1 %v4534_v33 }
 0x17d   : > { %2166 = vmatmul.mubr.bf16.gmra.mrb[68].mxu0 %v5072_v30  ;;  %2552 = vmatmul.mubr.bf16.gmra.mrb[68].mxu1 %v5072_v30  ;;  %v4540_v30 = vld [vmem:[%s5740_s5 + $0x60] sm:$0xff]  }
 0x17e   : > { %2175 = vmatprep.mubr.bf16.mxu0 %v5110_v16  ;;  %2561 = vmatprep.mubr.bf16.mxu1 %v5110_v16  ;;  %v4542_v16 = vld [vmem:[%s5740_s5 + $0xe0] sm:$0xff]  }
 0x17f   : > { %3808 = vmatpush3.bf16.msra.mxu0 %v4533_v1  ;;  %3920 = vmatpush3.bf16.msra.mxu1 %v4535_v61 }
 0x180   : > { %3809 = vmatprep.subr.bf16.mxu0 %v4536_v4  ;;  %3921 = vmatprep.subr.bf16.mxu1 %v4538_v7 }
 0x183   : > { %3810 = vmatpush3.bf16.msra.mxu0 %v4537_v2  ;;  %3922 = vmatpush3.bf16.msra.mxu1 %v4539_v3 }
 0x184   : > { %3811 = vmatprep.subr.bf16.mxu0 %v4540_v30  ;;  %3923 = vmatprep.subr.bf16.mxu1 %v4542_v16 }
 0x185   : > { %2176 = vmatmul.mubr.bf16.gmra.mrb[72].mxu0 %v5108_v13  ;;  %2562 = vmatmul.mubr.bf16.gmra.mrb[72].mxu1 %v5108_v13  ;;  %v4548_v13 = vld [vmem:[%s5740_s5 + $0x70] sm:$0xff]  }
 0x186   : > { %2185 = vmatprep.mubr.bf16.mxu0 %v5146_v62  ;;  %2571 = vmatprep.mubr.bf16.mxu1 %v5146_v62  ;;  %v4550_v62 = vld [vmem:[%s5740_s5 + $0xf0] sm:$0xff]  }
 0x187   : > { %3812 = vmatpush3.bf16.msra.mxu0 %v4541_v8  ;;  %3924 = vmatpush3.bf16.msra.mxu1 %v4543_v11 }
 0x188   : > { %3813 = vmatprep.subr.bf16.mxu0 %v4544_v14  ;;  %3925 = vmatprep.subr.bf16.mxu1 %v4546_v15 }
 0x18b   : > { %3814 = vmatpush3.bf16.msra.mxu0 %v4545_v22  ;;  %3926 = vmatpush3.bf16.msra.mxu1 %v4547_v23 }
 0x18c   : > { %3815 = vmatprep.subr.bf16.mxu0 %v4548_v13  ;;  %3927 = vmatprep.subr.bf16.mxu1 %v4550_v62 }
 0x18d   : > { %2186 = vmatmul.mubr.bf16.gmra.mrb[76].mxu0 %v5144_v58  ;;  %2572 = vmatmul.mubr.bf16.gmra.mrb[76].mxu1 %v5144_v58  ;;  %v1268_v58 = vld [vmem:[%s5739_s4] sm:$0xf] }
 0x18e   : > { %2195 = vmatprep.mubr.bf16.mxu0 %v5182_v45  ;;  %2581 = vmatprep.mubr.bf16.mxu1 %v5182_v45  ;;  %v5519_v45 = vrot.slane %v1268_v58, %v343_v55 }
 0x18f   : > { %3816 = vmatpush3.bf16.msra.mxu0 %v4549_v24  ;;  %3928 = vmatpush3.bf16.msra.mxu1 %v4551_v26 }
 0x190   : > { %3817 = vmatprep.subr.bf16.mxu0 %v4552_v27  ;;  %3929 = vmatprep.subr.bf16.mxu1 %v4554_v29 }
 0x193   : > { %3818 = vmatpush3.bf16.msra.mxu0 %v4553_v31  ;;  %3930 = vmatpush3.bf16.msra.mxu1 %v4555_v34 }
 0x195   : > { %2196 = vmatmul.mubr.bf16.gmra.mrb[80].mxu0 %v5180_v42  ;;  %2582 = vmatmul.mubr.bf16.gmra.mrb[80].mxu1 %v5180_v42  ;;  %v5515_v42 = vrot.slane %v1268_v58, %v335_v38 }
 0x196   : > { %2205 = vmatprep.mubr.bf16.mxu0 %v5218_v28  ;;  %2591 = vmatprep.mubr.bf16.mxu1 %v5218_v28  ;;  %v5527_v28 = vrot.slane %v1268_v58, %v347_v60 }
 0x19d   : > { %2206 = vmatmul.mubr.bf16.gmra.mrb[84].mxu0 %v5216_v25  ;;  %2592 = vmatmul.mubr.bf16.gmra.mrb[84].mxu1 %v5216_v25  ;;  %v5523_v25 = vrot.slane %v1268_v58, %v339_v40 }
 0x19e   : > { %2215 = vmatprep.mubr.bf16.mxu0 %v5248_v17  ;;  %2601 = vmatprep.mubr.bf16.mxu1 %v5248_v17 }
 0x1a5   : > { %2216 = vmatmul.mubr.bf16.gmra.mrb[88].mxu0 %v5246_v12  ;;  %2602 = vmatmul.mubr.bf16.gmra.mrb[88].mxu1 %v5246_v12 }
 0x1a6   : > { %2225 = vmatprep.mubr.bf16.mxu0 %v5260_v59  ;;  %2611 = vmatprep.mubr.bf16.mxu1 %v5260_v59 }
 0x1ad   : > { %2226 = vmatmul.mubr.bf16.gmra.mrb[92].mxu0 %v5258_v52  ;;  %2612 = vmatmul.mubr.bf16.gmra.mrb[92].mxu1 %v5258_v52 }
 0x1ae   : > { %2235 = vmatprep.mubr.bf16.mxu0 %v5272_v36  ;;  %2621 = vmatprep.mubr.bf16.mxu1 %v5272_v36 }
 0x1b5   : > { %2236 = vmatmul.mubr.bf16.gmra.mrb[96].mxu0 %v5270_v32  ;;  %2622 = vmatmul.mubr.bf16.gmra.mrb[96].mxu1 %v5270_v32 }
 0x1b6   : > { %2245 = vmatprep.mubr.bf16.mxu0 %v5284_v21  ;;  %2631 = vmatprep.mubr.bf16.mxu1 %v5284_v21 }
 0x1bd   : > { %2246 = vmatmul.mubr.bf16.gmra.mrb[100].mxu0 %v5282_v18  ;;  %2632 = vmatmul.mubr.bf16.gmra.mrb[100].mxu1 %v5282_v18 }
 0x1be   : > { %2255 = vmatprep.mubr.bf16.mxu0 %v5302_v9  ;;  %2641 = vmatprep.mubr.bf16.mxu1 %v5302_v9 }
 0x1c5   : > { %2256 = vmatmul.mubr.bf16.gmra.mrb[104].mxu0 %v5300_v5  ;;  %2642 = vmatmul.mubr.bf16.gmra.mrb[104].mxu1 %v5300_v5 }
 0x1c6   : > { %2265 = vmatprep.mubr.bf16.mxu0 %v5314_v0  ;;  %2651 = vmatprep.mubr.bf16.mxu1 %v5314_v0 }
 0x1cd   : > { %2266 = vmatmul.mubr.bf16.gmra.mrb[108].mxu0 %v5312_v56  ;;  %2652 = vmatmul.mubr.bf16.gmra.mrb[108].mxu1 %v5312_v56 }
 0x1ce   : > { %2275 = vmatprep.mubr.bf16.mxu0 %v5326_v51  ;;  %2661 = vmatprep.mubr.bf16.mxu1 %v5326_v51 }
 0x1d5   : > { %2276 = vmatmul.mubr.bf16.gmra.mrb[112].mxu0 %v5324_v48  ;;  %2662 = vmatmul.mubr.bf16.gmra.mrb[112].mxu1 %v5324_v48 }
 0x1d6   : > { %2285 = vmatprep.mubr.bf16.mxu0 %v5338_v49  ;;  %2671 = vmatprep.mubr.bf16.mxu1 %v5338_v49 }
 0x1dd   : > { %2286 = vmatmul.mubr.bf16.gmra.mrb[116].mxu0 %v5336_v44  ;;  %2672 = vmatmul.mubr.bf16.gmra.mrb[116].mxu1 %v5336_v44 }
 0x1de   : > { %2295 = vmatprep.mubr.bf16.mxu0 %v5348_v20  ;;  %2681 = vmatprep.mubr.bf16.mxu1 %v5348_v20 }
 0x1e5   : > { %2296 = vmatmul.mubr.bf16.gmra.mrb[120].mxu0 %v5346_v19  ;;  %2682 = vmatmul.mubr.bf16.gmra.mrb[120].mxu1 %v5346_v19 }
 0x1e6   : > { %2305 = vmatprep.mubr.bf16.mxu0 %v5378_v41  ;;  %2691 = vmatprep.mubr.bf16.mxu1 %v5378_v41 }
 0x1ed   : > { %2306 = vmatmul.mubr.bf16.gmra.mrb[124].mxu0 %v5370_v54  ;;  %2692 = vmatmul.mubr.bf16.gmra.mrb[124].mxu1 %v5370_v54 }
 0x248   : > { %v2157_v12 = vpop.f32.mrb[64].mxu0  ;;  %v2543_v17 = vpop.f32.mrb[64].mxu1 }
 0x249   : > { %v4027_v52 = vadd.f32 %v2157_v12, %v5515_v42  ;;  %v4091_v59 = vadd.f32 %v2543_v17, %v5519_v45  ;;  %v2159_v38 = vpop.f32.mrb[65].mxu0  ;;  %v2545_v32 = vpop.f32.mrb[65].mxu1 }
 0x24a   : > { %v4028_v36 = vadd.f32 %v2159_v38, %v5523_v25  ;;  %v4092_v55 = vadd.f32 %v2545_v32, %v5527_v28  ;;  %v2161_v18 = vpop.f32.mrb[66].mxu0  ;;  %v2547_v21 = vpop.f32.mrb[66].mxu1 }
 0x24b   : > { %v4029_v40 = vadd.f32 %v2161_v18, %v5515_v42  ;;  %v4093_v37 = vadd.f32 %v2547_v21, %v5519_v45  ;;  %v2163_v60 = vpop.f32.mrb[67].mxu0  ;;  %v2549_v5 = vpop.f32.mrb[67].mxu1  ;;  %v2702_v0 = vmax.f32 %v4027_v52, 0.0  ;;  %v2704_v48 = vmax.f32 %v4091_v59, 0.0 }
 0x24c   : > { %v4030_v9 = vadd.f32 %v2163_v60, %v5523_v25  ;;  %v4094_v56 = vadd.f32 %v2549_v5, %v5527_v28  ;;  %v2703_v49 = vmax.f32 %v4028_v36, 0.0  ;;  %v2705_v19 = vmax.f32 %v4092_v55, 0.0 }
 0x24d   : > { %v2706_v51 = vmax.f32 %v4029_v40, 0.0  ;;  %v2708_v44 = vmax.f32 %v4093_v37, 0.0 }
 0x24e   : > { %v2707_v20 = vmax.f32 %v4030_v9, 0.0  ;;  %v2709_v57 = vmax.f32 %v4094_v56, 0.0 }
 0x24f   : > { %v2830_v35 = vpack.c.bf16 %v2706_v51, %v2702_v0  ;;  %v2832_v39 = vpack.c.bf16 %v2708_v44, %v2704_v48 }
 0x250   : > { %v2831_v43 = vpack.c.bf16 %v2707_v20, %v2703_v49  ;;  %v2833_v46 = vpack.c.bf16 %v2709_v57, %v2705_v19  ;;  %v2167_v6 = vpop.f32.mrb[68].mxu0  ;;  %v2553_v47 = vpop.f32.mrb[68].mxu1 }
 0x251   : > { %v4031_v50 = vadd.f32 %v2167_v6, %v5515_v42  ;;  %v4095_v54 = vadd.f32 %v2553_v47, %v5519_v45  ;;  %v2169_v10 = vpop.f32.mrb[69].mxu0  ;;  %v2555_v63 = vpop.f32.mrb[69].mxu1 }
 0x252   : > { %v4032_v41 = vadd.f32 %v2169_v10, %v5523_v25  ;;  %v4096_v53 = vadd.f32 %v2555_v63, %v5527_v28  ;;  %v2171_v33 = vpop.f32.mrb[70].mxu0  ;;  %v2557_v1 = vpop.f32.mrb[70].mxu1  ;;  %3189 = vmatprep.mubr.bf16.mxu0 %v2831_v43  ;;  %3350 = vmatprep.mubr.bf16.mxu1 %v2833_v46 }
 0x253   : > { %v4033_v61 = vadd.f32 %v2171_v33, %v5515_v42  ;;  %v4097_v4 = vadd.f32 %v2557_v1, %v5519_v45  ;;  %v2173_v7 = vpop.f32.mrb[71].mxu0  ;;  %v2559_v2 = vpop.f32.mrb[71].mxu1  ;;  %3190 = vmatmul.mubr.bf16.vlgmr.msra.gmra.mrb[128].mxu0 %v2830_v35  ;;  %3351 = vmatmul.mubr.bf16.vlgmr.msra.gmra.mrb[128].mxu1 %v2832_v39  ;;  %v2710_v16 = vmax.f32 %v4031_v50, 0.0  ;;  %v2712_v8 = vmax.f32 %v4095_v54, 0.0 }
 0x254   : > { %v4034_v3 = vadd.f32 %v2173_v7, %v5523_v25  ;;  %v4098_v30 = vadd.f32 %v2559_v2, %v5527_v28  ;;  %v2711_v15 = vmax.f32 %v4032_v41, 0.0  ;;  %v2713_v22 = vmax.f32 %v4096_v53, 0.0 }
 0x255   : > { %v2714_v11 = vmax.f32 %v4033_v61, 0.0  ;;  %v2716_v14 = vmax.f32 %v4097_v4, 0.0 }
 0x256   : > { %v2715_v23 = vmax.f32 %v4034_v3, 0.0  ;;  %v2717_v13 = vmax.f32 %v4098_v30, 0.0 }
 0x257   : > { %v2834_v62 = vpack.c.bf16 %v2714_v11, %v2710_v16  ;;  %v2836_v24 = vpack.c.bf16 %v2716_v14, %v2712_v8 }
 0x258   : > { %v2835_v26 = vpack.c.bf16 %v2715_v23, %v2711_v15  ;;  %v2837_v27 = vpack.c.bf16 %v2717_v13, %v2713_v22  ;;  %v2177_v29 = vpop.f32.mrb[72].mxu0  ;;  %v2563_v31 = vpop.f32.mrb[72].mxu1 }
 0x259   : > { %v4035_v34 = vadd.f32 %v2177_v29, %v5515_v42  ;;  %v4099_v58 = vadd.f32 %v2563_v31, %v5519_v45  ;;  %v2179_v12 = vpop.f32.mrb[73].mxu0  ;;  %v2565_v17 = vpop.f32.mrb[73].mxu1 }
 0x25a   : > { %v4036_v52 = vadd.f32 %v2179_v12, %v5523_v25  ;;  %v4100_v59 = vadd.f32 %v2565_v17, %v5527_v28  ;;  %v2181_v38 = vpop.f32.mrb[74].mxu0  ;;  %v2567_v32 = vpop.f32.mrb[74].mxu1  ;;  %3197 = vmatprep.mubr.bf16.mxu0 %v2835_v26  ;;  %3358 = vmatprep.mubr.bf16.mxu1 %v2837_v27 }
 0x25b   : > { %v4037_v36 = vadd.f32 %v2181_v38, %v5515_v42  ;;  %v4101_v55 = vadd.f32 %v2567_v32, %v5519_v45  ;;  %v2183_v18 = vpop.f32.mrb[75].mxu0  ;;  %v2569_v21 = vpop.f32.mrb[75].mxu1  ;;  %3198 = vmatmul.mubr.bf16.gmra.mrb[132].mxu0 %v2834_v62  ;;  %3359 = vmatmul.mubr.bf16.gmra.mrb[132].mxu1 %v2836_v24  ;;  %v2718_v60 = vmax.f32 %v4035_v34, 0.0  ;;  %v2720_v5 = vmax.f32 %v4099_v58, 0.0 }
 0x25c   : > { %v4038_v40 = vadd.f32 %v2183_v18, %v5523_v25  ;;  %v4102_v37 = vadd.f32 %v2569_v21, %v5527_v28  ;;  %v2719_v0 = vmax.f32 %v4036_v52, 0.0  ;;  %v2721_v48 = vmax.f32 %v4100_v59, 0.0 }
 0x25d   : > { %v2722_v9 = vmax.f32 %v4037_v36, 0.0  ;;  %v2724_v56 = vmax.f32 %v4101_v55, 0.0 }
 0x25e   : > { %v2723_v51 = vmax.f32 %v4038_v40, 0.0  ;;  %v2725_v44 = vmax.f32 %v4102_v37, 0.0 }
 0x25f   : > { %v2838_v49 = vpack.c.bf16 %v2722_v9, %v2718_v60  ;;  %v2840_v19 = vpack.c.bf16 %v2724_v56, %v2720_v5 }
 0x260   : > { %v2839_v20 = vpack.c.bf16 %v2723_v51, %v2719_v0  ;;  %v2841_v57 = vpack.c.bf16 %v2725_v44, %v2721_v48  ;;  %v2187_v35 = vpop.f32.mrb[76].mxu0  ;;  %v2573_v39 = vpop.f32.mrb[76].mxu1 }
 0x261   : > { %v4039_v43 = vadd.f32 %v2187_v35, %v5515_v42  ;;  %v4103_v46 = vadd.f32 %v2573_v39, %v5519_v45  ;;  %v2189_v6 = vpop.f32.mrb[77].mxu0  ;;  %v2575_v47 = vpop.f32.mrb[77].mxu1 }
 0x262   : > { %v4040_v50 = vadd.f32 %v2189_v6, %v5523_v25  ;;  %v4104_v54 = vadd.f32 %v2575_v47, %v5527_v28  ;;  %v2191_v10 = vpop.f32.mrb[78].mxu0  ;;  %v2577_v63 = vpop.f32.mrb[78].mxu1  ;;  %3205 = vmatprep.mubr.bf16.mxu0 %v2839_v20  ;;  %3366 = vmatprep.mubr.bf16.mxu1 %v2841_v57 }
 0x263   : > { %v4041_v41 = vadd.f32 %v2191_v10, %v5515_v42  ;;  %v4105_v53 = vadd.f32 %v2577_v63, %v5519_v45  ;;  %v2193_v33 = vpop.f32.mrb[79].mxu0  ;;  %v2579_v1 = vpop.f32.mrb[79].mxu1  ;;  %3206 = vmatmul.mubr.bf16.gmra.mrb[136].mxu0 %v2838_v49  ;;  %3367 = vmatmul.mubr.bf16.gmra.mrb[136].mxu1 %v2840_v19  ;;  %v2726_v7 = vmax.f32 %v4039_v43, 0.0  ;;  %v2728_v2 = vmax.f32 %v4103_v46, 0.0 }
 0x264   : > { %v4042_v61 = vadd.f32 %v2193_v33, %v5523_v25  ;;  %v4106_v4 = vadd.f32 %v2579_v1, %v5527_v28  ;;  %v2727_v16 = vmax.f32 %v4040_v50, 0.0  ;;  %v2729_v8 = vmax.f32 %v4104_v54, 0.0 }
 0x265   : > { %v2730_v3 = vmax.f32 %v4041_v41, 0.0  ;;  %v2732_v30 = vmax.f32 %v4105_v53, 0.0 }
 0x266   : > { %v2731_v11 = vmax.f32 %v4042_v61, 0.0  ;;  %v2733_v14 = vmax.f32 %v4106_v4, 0.0 }
 0x267   : > { %v2842_v15 = vpack.c.bf16 %v2730_v3, %v2726_v7  ;;  %v2844_v22 = vpack.c.bf16 %v2732_v30, %v2728_v2 }
 0x268   : > { %v2843_v23 = vpack.c.bf16 %v2731_v11, %v2727_v16  ;;  %v2845_v13 = vpack.c.bf16 %v2733_v14, %v2729_v8  ;;  %v2197_v62 = vpop.f32.mrb[80].mxu0  ;;  %v2583_v24 = vpop.f32.mrb[80].mxu1 }
 0x269   : > { %v4043_v26 = vadd.f32 %v2197_v62, %v5515_v42  ;;  %v4107_v27 = vadd.f32 %v2583_v24, %v5519_v45  ;;  %v2199_v29 = vpop.f32.mrb[81].mxu0  ;;  %v2585_v31 = vpop.f32.mrb[81].mxu1 }
 0x26a   : > { %v4044_v34 = vadd.f32 %v2199_v29, %v5523_v25  ;;  %v4108_v58 = vadd.f32 %v2585_v31, %v5527_v28  ;;  %v2201_v12 = vpop.f32.mrb[82].mxu0  ;;  %v2587_v17 = vpop.f32.mrb[82].mxu1  ;;  %3213 = vmatprep.mubr.bf16.mxu0 %v2843_v23  ;;  %3374 = vmatprep.mubr.bf16.mxu1 %v2845_v13 }
 0x26b   : > { %v4045_v52 = vadd.f32 %v2201_v12, %v5515_v42  ;;  %v4109_v59 = vadd.f32 %v2587_v17, %v5519_v45  ;;  %v2203_v38 = vpop.f32.mrb[83].mxu0  ;;  %v2589_v32 = vpop.f32.mrb[83].mxu1  ;;  %3214 = vmatmul.mubr.bf16.gmra.mrb[140].mxu0 %v2842_v15  ;;  %3375 = vmatmul.mubr.bf16.gmra.mrb[140].mxu1 %v2844_v22  ;;  %v2734_v18 = vmax.f32 %v4043_v26, 0.0  ;;  %v2736_v21 = vmax.f32 %v4107_v27, 0.0 }
 0x26c   : > { %v4046_v36 = vadd.f32 %v2203_v38, %v5523_v25  ;;  %v4110_v55 = vadd.f32 %v2589_v32, %v5527_v28  ;;  %v2735_v60 = vmax.f32 %v4044_v34, 0.0  ;;  %v2737_v5 = vmax.f32 %v4108_v58, 0.0 }
 0x26d   : > { %v2738_v40 = vmax.f32 %v4045_v52, 0.0  ;;  %v2740_v37 = vmax.f32 %v4109_v59, 0.0 }
 0x26e   : > { %v2739_v9 = vmax.f32 %v4046_v36, 0.0  ;;  %v2741_v56 = vmax.f32 %v4110_v55, 0.0 }
 0x26f   : > { %v2846_v0 = vpack.c.bf16 %v2738_v40, %v2734_v18  ;;  %v2848_v48 = vpack.c.bf16 %v2740_v37, %v2736_v21 }
 0x270   : > { %v2847_v51 = vpack.c.bf16 %v2739_v9, %v2735_v60  ;;  %v2849_v44 = vpack.c.bf16 %v2741_v56, %v2737_v5  ;;  %v2207_v49 = vpop.f32.mrb[84].mxu0  ;;  %v2593_v19 = vpop.f32.mrb[84].mxu1 }
 0x271   : > { %v4047_v20 = vadd.f32 %v2207_v49, %v5515_v42  ;;  %v4111_v57 = vadd.f32 %v2593_v19, %v5519_v45  ;;  %v2209_v35 = vpop.f32.mrb[85].mxu0  ;;  %v2595_v39 = vpop.f32.mrb[85].mxu1 }
 0x272   : > { %v4048_v43 = vadd.f32 %v2209_v35, %v5523_v25  ;;  %v4112_v46 = vadd.f32 %v2595_v39, %v5527_v28  ;;  %v2211_v6 = vpop.f32.mrb[86].mxu0  ;;  %v2597_v47 = vpop.f32.mrb[86].mxu1  ;;  %3221 = vmatprep.mubr.bf16.mxu0 %v2847_v51  ;;  %3382 = vmatprep.mubr.bf16.mxu1 %v2849_v44 }
 0x273   : > { %v4049_v50 = vadd.f32 %v2211_v6, %v5515_v42  ;;  %v4113_v54 = vadd.f32 %v2597_v47, %v5519_v45  ;;  %v2213_v10 = vpop.f32.mrb[87].mxu0  ;;  %v2599_v63 = vpop.f32.mrb[87].mxu1  ;;  %3222 = vmatmul.mubr.bf16.gmra.mrb[144].mxu0 %v2846_v0  ;;  %3383 = vmatmul.mubr.bf16.gmra.mrb[144].mxu1 %v2848_v48  ;;  %v2742_v33 = vmax.f32 %v4047_v20, 0.0  ;;  %v2744_v1 = vmax.f32 %v4111_v57, 0.0 }
 0x274   : > { %v4050_v41 = vadd.f32 %v2213_v10, %v5523_v25  ;;  %v4114_v53 = vadd.f32 %v2599_v63, %v5527_v28  ;;  %v2743_v7 = vmax.f32 %v4048_v43, 0.0  ;;  %v2745_v2 = vmax.f32 %v4112_v46, 0.0 }
 0x275   : > { %v2746_v61 = vmax.f32 %v4049_v50, 0.0  ;;  %v2748_v4 = vmax.f32 %v4113_v54, 0.0 }
 0x276   : > { %v2747_v3 = vmax.f32 %v4050_v41, 0.0  ;;  %v2749_v30 = vmax.f32 %v4114_v53, 0.0 }
 0x277   : > { %v2850_v16 = vpack.c.bf16 %v2746_v61, %v2742_v33  ;;  %v2852_v8 = vpack.c.bf16 %v2748_v4, %v2744_v1 }
 0x278   : > { %v2851_v11 = vpack.c.bf16 %v2747_v3, %v2743_v7  ;;  %v2853_v14 = vpack.c.bf16 %v2749_v30, %v2745_v2  ;;  %v2217_v15 = vpop.f32.mrb[88].mxu0  ;;  %v2603_v22 = vpop.f32.mrb[88].mxu1 }
 0x279   : > { %v4051_v23 = vadd.f32 %v2217_v15, %v5515_v42  ;;  %v4115_v13 = vadd.f32 %v2603_v22, %v5519_v45  ;;  %v2219_v62 = vpop.f32.mrb[89].mxu0  ;;  %v2605_v24 = vpop.f32.mrb[89].mxu1 }
 0x27a   : > { %v4052_v26 = vadd.f32 %v2219_v62, %v5523_v25  ;;  %v4116_v27 = vadd.f32 %v2605_v24, %v5527_v28  ;;  %v2221_v29 = vpop.f32.mrb[90].mxu0  ;;  %v2607_v31 = vpop.f32.mrb[90].mxu1  ;;  %3229 = vmatprep.mubr.bf16.mxu0 %v2851_v11  ;;  %3390 = vmatprep.mubr.bf16.mxu1 %v2853_v14 }
 0x27b   : > { %v4053_v34 = vadd.f32 %v2221_v29, %v5515_v42  ;;  %v4117_v58 = vadd.f32 %v2607_v31, %v5519_v45  ;;  %v2223_v12 = vpop.f32.mrb[91].mxu0  ;;  %v2609_v17 = vpop.f32.mrb[91].mxu1  ;;  %3230 = vmatmul.mubr.bf16.gmra.mrb[148].mxu0 %v2850_v16  ;;  %3391 = vmatmul.mubr.bf16.gmra.mrb[148].mxu1 %v2852_v8  ;;  %v2750_v38 = vmax.f32 %v4051_v23, 0.0  ;;  %v2752_v32 = vmax.f32 %v4115_v13, 0.0 }
 0x27c   : > { %v4054_v52 = vadd.f32 %v2223_v12, %v5523_v25  ;;  %v4118_v59 = vadd.f32 %v2609_v17, %v5527_v28  ;;  %v2751_v18 = vmax.f32 %v4052_v26, 0.0  ;;  %v2753_v21 = vmax.f32 %v4116_v27, 0.0 }
 0x27d   : > { %v2754_v36 = vmax.f32 %v4053_v34, 0.0  ;;  %v2756_v55 = vmax.f32 %v4117_v58, 0.0 }
 0x27e   : > { %v2755_v40 = vmax.f32 %v4054_v52, 0.0  ;;  %v2757_v37 = vmax.f32 %v4118_v59, 0.0 }
 0x27f   : > { %v2854_v60 = vpack.c.bf16 %v2754_v36, %v2750_v38  ;;  %v2856_v5 = vpack.c.bf16 %v2756_v55, %v2752_v32 }
 0x280   : > { %v2855_v9 = vpack.c.bf16 %v2755_v40, %v2751_v18  ;;  %v2857_v56 = vpack.c.bf16 %v2757_v37, %v2753_v21  ;;  %v2227_v0 = vpop.f32.mrb[92].mxu0  ;;  %v2613_v48 = vpop.f32.mrb[92].mxu1 }
 0x281   : > { %v4055_v51 = vadd.f32 %v2227_v0, %v5515_v42  ;;  %v4119_v44 = vadd.f32 %v2613_v48, %v5519_v45  ;;  %v2229_v49 = vpop.f32.mrb[93].mxu0  ;;  %v2615_v19 = vpop.f32.mrb[93].mxu1 }
 0x282   : > { %v4056_v20 = vadd.f32 %v2229_v49, %v5523_v25  ;;  %v4120_v57 = vadd.f32 %v2615_v19, %v5527_v28  ;;  %v2231_v35 = vpop.f32.mrb[94].mxu0  ;;  %v2617_v39 = vpop.f32.mrb[94].mxu1  ;;  %3237 = vmatprep.mubr.bf16.mxu0 %v2855_v9  ;;  %3398 = vmatprep.mubr.bf16.mxu1 %v2857_v56 }
 0x283   : > { %v4057_v43 = vadd.f32 %v2231_v35, %v5515_v42  ;;  %v4121_v46 = vadd.f32 %v2617_v39, %v5519_v45  ;;  %v2233_v6 = vpop.f32.mrb[95].mxu0  ;;  %v2619_v47 = vpop.f32.mrb[95].mxu1  ;;  %3238 = vmatmul.mubr.bf16.gmra.mrb[152].mxu0 %v2854_v60  ;;  %3399 = vmatmul.mubr.bf16.gmra.mrb[152].mxu1 %v2856_v5  ;;  %v2758_v10 = vmax.f32 %v4055_v51, 0.0  ;;  %v2760_v63 = vmax.f32 %v4119_v44, 0.0 }
 0x284   : > { %v4058_v50 = vadd.f32 %v2233_v6, %v5523_v25  ;;  %v4122_v54 = vadd.f32 %v2619_v47, %v5527_v28  ;;  %v2759_v33 = vmax.f32 %v4056_v20, 0.0  ;;  %v2761_v1 = vmax.f32 %v4120_v57, 0.0 }
 0x285   : > { %v2762_v41 = vmax.f32 %v4057_v43, 0.0  ;;  %v2764_v53 = vmax.f32 %v4121_v46, 0.0 }
 0x286   : > { %v2763_v61 = vmax.f32 %v4058_v50, 0.0  ;;  %v2765_v4 = vmax.f32 %v4122_v54, 0.0 }
 0x287   : > { %v2858_v7 = vpack.c.bf16 %v2762_v41, %v2758_v10  ;;  %v2860_v2 = vpack.c.bf16 %v2764_v53, %v2760_v63 }
 0x288   : > { %v2859_v3 = vpack.c.bf16 %v2763_v61, %v2759_v33  ;;  %v2861_v30 = vpack.c.bf16 %v2765_v4, %v2761_v1  ;;  %v2237_v16 = vpop.f32.mrb[96].mxu0  ;;  %v2623_v8 = vpop.f32.mrb[96].mxu1 }
 0x289   : > { %v4059_v11 = vadd.f32 %v2237_v16, %v5515_v42  ;;  %v4123_v14 = vadd.f32 %v2623_v8, %v5519_v45  ;;  %v2239_v15 = vpop.f32.mrb[97].mxu0  ;;  %v2625_v22 = vpop.f32.mrb[97].mxu1 }
 0x28a   : > { %v4060_v23 = vadd.f32 %v2239_v15, %v5523_v25  ;;  %v4124_v13 = vadd.f32 %v2625_v22, %v5527_v28  ;;  %v2241_v62 = vpop.f32.mrb[98].mxu0  ;;  %v2627_v24 = vpop.f32.mrb[98].mxu1  ;;  %3245 = vmatprep.mubr.bf16.mxu0 %v2859_v3  ;;  %3406 = vmatprep.mubr.bf16.mxu1 %v2861_v30 }
 0x28b   : > { %v4061_v26 = vadd.f32 %v2241_v62, %v5515_v42  ;;  %v4125_v27 = vadd.f32 %v2627_v24, %v5519_v45  ;;  %v2243_v29 = vpop.f32.mrb[99].mxu0  ;;  %v2629_v31 = vpop.f32.mrb[99].mxu1  ;;  %3246 = vmatmul.mubr.bf16.gmra.mrb[156].mxu0 %v2858_v7  ;;  %3407 = vmatmul.mubr.bf16.gmra.mrb[156].mxu1 %v2860_v2  ;;  %v2766_v12 = vmax.f32 %v4059_v11, 0.0  ;;  %v2768_v17 = vmax.f32 %v4123_v14, 0.0 }
 0x28c   : > { %v4062_v34 = vadd.f32 %v2243_v29, %v5523_v25  ;;  %v4126_v58 = vadd.f32 %v2629_v31, %v5527_v28  ;;  %v2767_v38 = vmax.f32 %v4060_v23, 0.0  ;;  %v2769_v32 = vmax.f32 %v4124_v13, 0.0 }
 0x28d   : > { %v2770_v52 = vmax.f32 %v4061_v26, 0.0  ;;  %v2772_v59 = vmax.f32 %v4125_v27, 0.0 }
 0x28e   : > { %v2771_v36 = vmax.f32 %v4062_v34, 0.0  ;;  %v2773_v55 = vmax.f32 %v4126_v58, 0.0 }
 0x28f   : > { %v2862_v18 = vpack.c.bf16 %v2770_v52, %v2766_v12  ;;  %v2864_v21 = vpack.c.bf16 %v2772_v59, %v2768_v17 }
 0x290   : > { %v2863_v40 = vpack.c.bf16 %v2771_v36, %v2767_v38  ;;  %v2865_v37 = vpack.c.bf16 %v2773_v55, %v2769_v32  ;;  %v2247_v60 = vpop.f32.mrb[100].mxu0  ;;  %v2633_v5 = vpop.f32.mrb[100].mxu1 }
 0x291   : > { %v4063_v9 = vadd.f32 %v2247_v60, %v5515_v42  ;;  %v4127_v56 = vadd.f32 %v2633_v5, %v5519_v45  ;;  %v2249_v0 = vpop.f32.mrb[101].mxu0  ;;  %v2635_v48 = vpop.f32.mrb[101].mxu1 }
 0x292   : > { %v4064_v51 = vadd.f32 %v2249_v0, %v5523_v25  ;;  %v4128_v44 = vadd.f32 %v2635_v48, %v5527_v28  ;;  %v2251_v49 = vpop.f32.mrb[102].mxu0  ;;  %v2637_v19 = vpop.f32.mrb[102].mxu1  ;;  %3253 = vmatprep.mubr.bf16.mxu0 %v2863_v40  ;;  %3414 = vmatprep.mubr.bf16.mxu1 %v2865_v37 }
 0x293   : > { %v4065_v20 = vadd.f32 %v2251_v49, %v5515_v42  ;;  %v4129_v57 = vadd.f32 %v2637_v19, %v5519_v45  ;;  %v2253_v35 = vpop.f32.mrb[103].mxu0  ;;  %v2639_v39 = vpop.f32.mrb[103].mxu1  ;;  %3254 = vmatmul.mubr.bf16.gmra.mrb[160].mxu0 %v2862_v18  ;;  %3415 = vmatmul.mubr.bf16.gmra.mrb[160].mxu1 %v2864_v21  ;;  %v2774_v6 = vmax.f32 %v4063_v9, 0.0  ;;  %v2776_v47 = vmax.f32 %v4127_v56, 0.0 }
 0x294   : > { %v4066_v43 = vadd.f32 %v2253_v35, %v5523_v25  ;;  %v4130_v46 = vadd.f32 %v2639_v39, %v5527_v28  ;;  %v2775_v10 = vmax.f32 %v4064_v51, 0.0  ;;  %v2777_v63 = vmax.f32 %v4128_v44, 0.0 }
 0x295   : > { %v2778_v50 = vmax.f32 %v4065_v20, 0.0  ;;  %v2780_v54 = vmax.f32 %v4129_v57, 0.0 }
 0x296   : > { %v2779_v41 = vmax.f32 %v4066_v43, 0.0  ;;  %v2781_v53 = vmax.f32 %v4130_v46, 0.0 }
 0x297   : > { %v2866_v33 = vpack.c.bf16 %v2778_v50, %v2774_v6  ;;  %v2868_v1 = vpack.c.bf16 %v2780_v54, %v2776_v47 }
 0x298   : > { %v2867_v61 = vpack.c.bf16 %v2779_v41, %v2775_v10  ;;  %v2869_v4 = vpack.c.bf16 %v2781_v53, %v2777_v63  ;;  %v2257_v7 = vpop.f32.mrb[104].mxu0  ;;  %v2643_v2 = vpop.f32.mrb[104].mxu1 }
 0x299   : > { %v4067_v3 = vadd.f32 %v2257_v7, %v5515_v42  ;;  %v4131_v30 = vadd.f32 %v2643_v2, %v5519_v45  ;;  %v2259_v16 = vpop.f32.mrb[105].mxu0  ;;  %v2645_v8 = vpop.f32.mrb[105].mxu1 }
 0x29a   : > { %v4068_v11 = vadd.f32 %v2259_v16, %v5523_v25  ;;  %v4132_v14 = vadd.f32 %v2645_v8, %v5527_v28  ;;  %v2261_v15 = vpop.f32.mrb[106].mxu0  ;;  %v2647_v22 = vpop.f32.mrb[106].mxu1  ;;  %3261 = vmatprep.mubr.bf16.mxu0 %v2867_v61  ;;  %3422 = vmatprep.mubr.bf16.mxu1 %v2869_v4 }
 0x29b   : > { %v4069_v23 = vadd.f32 %v2261_v15, %v5515_v42  ;;  %v4133_v13 = vadd.f32 %v2647_v22, %v5519_v45  ;;  %v2263_v62 = vpop.f32.mrb[107].mxu0  ;;  %v2649_v24 = vpop.f32.mrb[107].mxu1  ;;  %3262 = vmatmul.mubr.bf16.gmra.mrb[164].mxu0 %v2866_v33  ;;  %3423 = vmatmul.mubr.bf16.gmra.mrb[164].mxu1 %v2868_v1  ;;  %v2782_v29 = vmax.f32 %v4067_v3, 0.0  ;;  %v2784_v31 = vmax.f32 %v4131_v30, 0.0 }
 0x29c   : > { %v4070_v26 = vadd.f32 %v2263_v62, %v5523_v25  ;;  %v4134_v27 = vadd.f32 %v2649_v24, %v5527_v28  ;;  %v2783_v12 = vmax.f32 %v4068_v11, 0.0  ;;  %v2785_v17 = vmax.f32 %v4132_v14, 0.0 }
 0x29d   : > { %v2786_v34 = vmax.f32 %v4069_v23, 0.0  ;;  %v2788_v58 = vmax.f32 %v4133_v13, 0.0 }
 0x29e   : > { %v2787_v52 = vmax.f32 %v4070_v26, 0.0  ;;  %v2789_v59 = vmax.f32 %v4134_v27, 0.0 }
 0x29f   : > { %v2870_v38 = vpack.c.bf16 %v2786_v34, %v2782_v29  ;;  %v2872_v32 = vpack.c.bf16 %v2788_v58, %v2784_v31 }
 0x2a0   : > { %v2871_v36 = vpack.c.bf16 %v2787_v52, %v2783_v12  ;;  %v2873_v55 = vpack.c.bf16 %v2789_v59, %v2785_v17  ;;  %v2267_v18 = vpop.f32.mrb[108].mxu0  ;;  %v2653_v21 = vpop.f32.mrb[108].mxu1 }
 0x2a1   : > { %v4071_v40 = vadd.f32 %v2267_v18, %v5515_v42  ;;  %v4135_v37 = vadd.f32 %v2653_v21, %v5519_v45  ;;  %v2269_v60 = vpop.f32.mrb[109].mxu0  ;;  %v2655_v5 = vpop.f32.mrb[109].mxu1 }
 0x2a2   : > { %v4072_v9 = vadd.f32 %v2269_v60, %v5523_v25  ;;  %v4136_v56 = vadd.f32 %v2655_v5, %v5527_v28  ;;  %v2271_v0 = vpop.f32.mrb[110].mxu0  ;;  %v2657_v48 = vpop.f32.mrb[110].mxu1  ;;  %3269 = vmatprep.mubr.bf16.mxu0 %v2871_v36  ;;  %3430 = vmatprep.mubr.bf16.mxu1 %v2873_v55 }
 0x2a3   : > { %v4073_v51 = vadd.f32 %v2271_v0, %v5515_v42  ;;  %v4137_v44 = vadd.f32 %v2657_v48, %v5519_v45  ;;  %v2273_v49 = vpop.f32.mrb[111].mxu0  ;;  %v2659_v19 = vpop.f32.mrb[111].mxu1  ;;  %3270 = vmatmul.mubr.bf16.gmra.mrb[168].mxu0 %v2870_v38  ;;  %3431 = vmatmul.mubr.bf16.gmra.mrb[168].mxu1 %v2872_v32  ;;  %v2790_v35 = vmax.f32 %v4071_v40, 0.0  ;;  %v2792_v39 = vmax.f32 %v4135_v37, 0.0 }
 0x2a4   : > { %v4074_v20 = vadd.f32 %v2273_v49, %v5523_v25  ;;  %v4138_v57 = vadd.f32 %v2659_v19, %v5527_v28  ;;  %v2791_v6 = vmax.f32 %v4072_v9, 0.0  ;;  %v2793_v47 = vmax.f32 %v4136_v56, 0.0 }
 0x2a5   : > { %v2794_v43 = vmax.f32 %v4073_v51, 0.0  ;;  %v2796_v46 = vmax.f32 %v4137_v44, 0.0 }
 0x2a6   : > { %v2795_v50 = vmax.f32 %v4074_v20, 0.0  ;;  %v2797_v54 = vmax.f32 %v4138_v57, 0.0 }
 0x2a7   : > { %v2874_v10 = vpack.c.bf16 %v2794_v43, %v2790_v35  ;;  %v2876_v63 = vpack.c.bf16 %v2796_v46, %v2792_v39 }
 0x2a8   : > { %v2875_v41 = vpack.c.bf16 %v2795_v50, %v2791_v6  ;;  %v2877_v53 = vpack.c.bf16 %v2797_v54, %v2793_v47  ;;  %v2277_v33 = vpop.f32.mrb[112].mxu0  ;;  %v2663_v1 = vpop.f32.mrb[112].mxu1 }
 0x2a9   : > { %v4075_v61 = vadd.f32 %v2277_v33, %v5515_v42  ;;  %v4139_v4 = vadd.f32 %v2663_v1, %v5519_v45  ;;  %v2279_v7 = vpop.f32.mrb[113].mxu0  ;;  %v2665_v2 = vpop.f32.mrb[113].mxu1 }
 0x2aa   : > { %v4076_v3 = vadd.f32 %v2279_v7, %v5523_v25  ;;  %v4140_v30 = vadd.f32 %v2665_v2, %v5527_v28  ;;  %v2281_v16 = vpop.f32.mrb[114].mxu0  ;;  %v2667_v8 = vpop.f32.mrb[114].mxu1  ;;  %3277 = vmatprep.mubr.bf16.mxu0 %v2875_v41  ;;  %3438 = vmatprep.mubr.bf16.mxu1 %v2877_v53 }
 0x2ab   : > { %v4077_v11 = vadd.f32 %v2281_v16, %v5515_v42  ;;  %v4141_v14 = vadd.f32 %v2667_v8, %v5519_v45  ;;  %v2283_v15 = vpop.f32.mrb[115].mxu0  ;;  %v2669_v22 = vpop.f32.mrb[115].mxu1  ;;  %3278 = vmatmul.mubr.bf16.gmra.mrb[172].mxu0 %v2874_v10  ;;  %3439 = vmatmul.mubr.bf16.gmra.mrb[172].mxu1 %v2876_v63  ;;  %v2798_v62 = vmax.f32 %v4075_v61, 0.0  ;;  %v2800_v24 = vmax.f32 %v4139_v4, 0.0 }
 0x2ac   : > { %v4078_v23 = vadd.f32 %v2283_v15, %v5523_v25  ;;  %v4142_v13 = vadd.f32 %v2669_v22, %v5527_v28  ;;  %v2799_v29 = vmax.f32 %v4076_v3, 0.0  ;;  %v2801_v31 = vmax.f32 %v4140_v30, 0.0 }
 0x2ad   : > { %v2802_v26 = vmax.f32 %v4077_v11, 0.0  ;;  %v2804_v27 = vmax.f32 %v4141_v14, 0.0 }
 0x2ae   : > { %v2803_v34 = vmax.f32 %v4078_v23, 0.0  ;;  %v2805_v58 = vmax.f32 %v4142_v13, 0.0 }
 0x2af   : > { %v2878_v12 = vpack.c.bf16 %v2802_v26, %v2798_v62  ;;  %v2880_v17 = vpack.c.bf16 %v2804_v27, %v2800_v24 }
 0x2b0   : > { %v2879_v52 = vpack.c.bf16 %v2803_v34, %v2799_v29  ;;  %v2881_v59 = vpack.c.bf16 %v2805_v58, %v2801_v31  ;;  %v2287_v38 = vpop.f32.mrb[116].mxu0  ;;  %v2673_v32 = vpop.f32.mrb[116].mxu1 }
 0x2b1   : > { %v4079_v36 = vadd.f32 %v2287_v38, %v5515_v42  ;;  %v4143_v55 = vadd.f32 %v2673_v32, %v5519_v45  ;;  %v2289_v18 = vpop.f32.mrb[117].mxu0  ;;  %v2675_v21 = vpop.f32.mrb[117].mxu1 }
 0x2b2   : > { %v4080_v40 = vadd.f32 %v2289_v18, %v5523_v25  ;;  %v4144_v37 = vadd.f32 %v2675_v21, %v5527_v28  ;;  %v2291_v60 = vpop.f32.mrb[118].mxu0  ;;  %v2677_v5 = vpop.f32.mrb[118].mxu1  ;;  %3285 = vmatprep.mubr.bf16.mxu0 %v2879_v52  ;;  %3446 = vmatprep.mubr.bf16.mxu1 %v2881_v59 }
 0x2b3   : > { %v4081_v9 = vadd.f32 %v2291_v60, %v5515_v42  ;;  %v4145_v56 = vadd.f32 %v2677_v5, %v5519_v45  ;;  %v2293_v0 = vpop.f32.mrb[119].mxu0  ;;  %v2679_v48 = vpop.f32.mrb[119].mxu1  ;;  %3286 = vmatmul.mubr.bf16.gmra.mrb[176].mxu0 %v2878_v12  ;;  %3447 = vmatmul.mubr.bf16.gmra.mrb[176].mxu1 %v2880_v17  ;;  %v2806_v49 = vmax.f32 %v4079_v36, 0.0  ;;  %v2808_v19 = vmax.f32 %v4143_v55, 0.0 }
 0x2b4   : > { %v4082_v51 = vadd.f32 %v2293_v0, %v5523_v25  ;;  %v4146_v44 = vadd.f32 %v2679_v48, %v5527_v28  ;;  %v2807_v35 = vmax.f32 %v4080_v40, 0.0  ;;  %v2809_v39 = vmax.f32 %v4144_v37, 0.0 }
 0x2b5   : > { %v2810_v20 = vmax.f32 %v4081_v9, 0.0  ;;  %v2812_v57 = vmax.f32 %v4145_v56, 0.0 }
 0x2b6   : > { %v2811_v43 = vmax.f32 %v4082_v51, 0.0  ;;  %v2813_v46 = vmax.f32 %v4146_v44, 0.0 }
 0x2b7   : > { %v2882_v6 = vpack.c.bf16 %v2810_v20, %v2806_v49  ;;  %v2884_v47 = vpack.c.bf16 %v2812_v57, %v2808_v19 }
 0x2b8   : > { %v2883_v50 = vpack.c.bf16 %v2811_v43, %v2807_v35  ;;  %v2885_v54 = vpack.c.bf16 %v2813_v46, %v2809_v39  ;;  %v2297_v10 = vpop.f32.mrb[120].mxu0  ;;  %v2683_v63 = vpop.f32.mrb[120].mxu1 }
 0x2b9   : > { %v4083_v41 = vadd.f32 %v2297_v10, %v5515_v42  ;;  %v4147_v53 = vadd.f32 %v2683_v63, %v5519_v45  ;;  %v2299_v33 = vpop.f32.mrb[121].mxu0  ;;  %v2685_v1 = vpop.f32.mrb[121].mxu1 }
 0x2ba   : > { %v4084_v61 = vadd.f32 %v2299_v33, %v5523_v25  ;;  %v4148_v4 = vadd.f32 %v2685_v1, %v5527_v28  ;;  %v2301_v7 = vpop.f32.mrb[122].mxu0  ;;  %v2687_v2 = vpop.f32.mrb[122].mxu1  ;;  %3293 = vmatprep.mubr.bf16.mxu0 %v2883_v50  ;;  %3454 = vmatprep.mubr.bf16.mxu1 %v2885_v54 }
 0x2bb   : > { %v4085_v3 = vadd.f32 %v2301_v7, %v5515_v42  ;;  %v4149_v30 = vadd.f32 %v2687_v2, %v5519_v45  ;;  %v2303_v16 = vpop.f32.mrb[123].mxu0  ;;  %v2689_v8 = vpop.f32.mrb[123].mxu1  ;;  %3294 = vmatmul.mubr.bf16.gmra.mrb[180].mxu0 %v2882_v6  ;;  %3455 = vmatmul.mubr.bf16.gmra.mrb[180].mxu1 %v2884_v47  ;;  %v2814_v15 = vmax.f32 %v4083_v41, 0.0  ;;  %v2816_v22 = vmax.f32 %v4147_v53, 0.0 }
 0x2bc   : > { %v4086_v11 = vadd.f32 %v2303_v16, %v5523_v25  ;;  %v4150_v14 = vadd.f32 %v2689_v8, %v5527_v28  ;;  %v2815_v62 = vmax.f32 %v4084_v61, 0.0  ;;  %v2817_v24 = vmax.f32 %v4148_v4, 0.0 }
 0x2bd   : > { %v2818_v23 = vmax.f32 %v4085_v3, 0.0  ;;  %v2820_v13 = vmax.f32 %v4149_v30, 0.0 }
 0x2be   : > { %v2819_v26 = vmax.f32 %v4086_v11, 0.0  ;;  %v2821_v27 = vmax.f32 %v4150_v14, 0.0 }
 0x2bf   : > { %v2886_v29 = vpack.c.bf16 %v2818_v23, %v2814_v15  ;;  %v2888_v31 = vpack.c.bf16 %v2820_v13, %v2816_v22 }
 0x2c0   : > { %v2887_v34 = vpack.c.bf16 %v2819_v26, %v2815_v62  ;;  %v2889_v58 = vpack.c.bf16 %v2821_v27, %v2817_v24  ;;  %v2307_v12 = vpop.f32.mrb[124].mxu0  ;;  %v2693_v17 = vpop.f32.mrb[124].mxu1 }
 0x2c1   : > { %v4087_v52 = vadd.f32 %v2307_v12, %v5515_v42  ;;  %v4151_v59 = vadd.f32 %v2693_v17, %v5519_v45  ;;  %v2309_v38 = vpop.f32.mrb[125].mxu0  ;;  %v2695_v32 = vpop.f32.mrb[125].mxu1 }
 0x2c2   : > { %v4088_v36 = vadd.f32 %v2309_v38, %v5523_v25  ;;  %v4152_v55 = vadd.f32 %v2695_v32, %v5527_v28  ;;  %v2311_v18 = vpop.f32.mrb[126].mxu0  ;;  %v2697_v21 = vpop.f32.mrb[126].mxu1  ;;  %3301 = vmatprep.mubr.bf16.mxu0 %v2887_v34  ;;  %3462 = vmatprep.mubr.bf16.mxu1 %v2889_v58 }
 0x2c3   : > { %v4089_v40 = vadd.f32 %v2311_v18, %v5515_v42  ;;  %v4153_v37 = vadd.f32 %v2697_v21, %v5519_v45  ;;  %v2313_v60 = vpop.f32.mrb[127].mxu0  ;;  %v2699_v5 = vpop.f32.mrb[127].mxu1  ;;  %3302 = vmatmul.mubr.bf16.gmra.mrb[184].mxu0 %v2886_v29  ;;  %3463 = vmatmul.mubr.bf16.gmra.mrb[184].mxu1 %v2888_v31  ;;  %v2822_v0 = vmax.f32 %v4087_v52, 0.0  ;;  %v2824_v48 = vmax.f32 %v4151_v59, 0.0 }
 0x2c4   : > { %v4090_v9 = vadd.f32 %v2313_v60, %v5523_v25  ;;  %v4154_v56 = vadd.f32 %v2699_v5, %v5527_v28  ;;  %v2823_v49 = vmax.f32 %v4088_v36, 0.0  ;;  %v2825_v19 = vmax.f32 %v4152_v55, 0.0  ;;  %v5660_v28 = vld [vmem:[%s5741_s6] ss:$0 sm:$0xff] }
 0x2c5   : > { %v2826_v51 = vmax.f32 %v4089_v40, 0.0  ;;  %v2828_v44 = vmax.f32 %v4153_v37, 0.0 }
 0x2c6   : > { %v2827_v20 = vmax.f32 %v4090_v9, 0.0  ;;  %v2829_v57 = vmax.f32 %v4154_v56, 0.0 }
 0x2c7   : > { %v2890_v42 = vpack.c.bf16 %v2826_v51, %v2822_v0  ;;  %v2892_v35 = vpack.c.bf16 %v2828_v44, %v2824_v48 }
 0x2c8   : > { %v2891_v45 = vpack.c.bf16 %v2827_v20, %v2823_v49  ;;  %v2893_v39 = vpack.c.bf16 %v2829_v57, %v2825_v19 }
 0x2ca   : > { %3309 = vmatprep.mubr.bf16.mxu0 %v2891_v45  ;;  %3470 = vmatprep.mubr.bf16.mxu1 %v2893_v39 }
 0x2cb   : > { %3310 = vmatmul.mubr.bf16.gmra.mrb[188].mxu0 %v2890_v42  ;;  %3471 = vmatmul.mubr.bf16.gmra.mrb[188].mxu1 %v2892_v35 }
 0x326   : > { %v3819_v25 = vpop.f32.mrb[128].mxu0  ;;  %v3931_v43 = vpop.f32.mrb[128].mxu1 }
 0x327   : > { %v3820_v46 = vpop.f32.mrb[129].mxu0  ;;  %v3932_v6 = vpop.f32.mrb[129].mxu1 }
 0x328   : > { %v3821_v47 = vadd.f32 %v3820_v46, %v3819_v25  ;;  %v3933_v50 = vadd.f32 %v3932_v6, %v3931_v43  ;;  %v3822_v54 = vpop.f32.mrb[130].mxu0  ;;  %v3934_v10 = vpop.f32.mrb[130].mxu1 }
 0x329   : > { %v3823_v63 = vpop.f32.mrb[131].mxu0  ;;  %v3935_v41 = vpop.f32.mrb[131].mxu1 }
 0x32a   : > { %v3192_v53 = vadd.f32 %v3821_v47, %v5660_v28  ;;  %v3824_v33 = vadd.f32 %v3823_v63, %v3822_v54  ;;  %v3936_v1 = vadd.f32 %v3935_v41, %v3934_v10 }
 0x32c   : > { %v3353_v61 = vadd.f32 %v3933_v50, %v3192_v53  ;;  %v3195_v4 = vadd.f32 %v3824_v33, %v5660_v28 }
 0x32e   : > { %3479 = vst [vmem:[%s5667_s19] sm:$0xff] %v3353_v61  ;;  %v3356_v7 = vadd.f32 %v3936_v1, %v3195_v4  ;;  %v3825_v2 = vpop.f32.mrb[132].mxu0  ;;  %v3937_v3 = vpop.f32.mrb[132].mxu1 }
 0x32f   : > { %v3826_v30 = vpop.f32.mrb[133].mxu0  ;;  %v3938_v16 = vpop.f32.mrb[133].mxu1 }
 0x330   : > { %3480 = vst [vmem:[%s5667_s19 + $0x8] sm:$0xff] %v3356_v7  ;;  %v3827_v8 = vadd.f32 %v3826_v30, %v3825_v2  ;;  %v3939_v11 = vadd.f32 %v3938_v16, %v3937_v3  ;;  %v3828_v14 = vpop.f32.mrb[134].mxu0  ;;  %v3940_v15 = vpop.f32.mrb[134].mxu1 }
 0x331   : > { %v3829_v22 = vpop.f32.mrb[135].mxu0  ;;  %v3941_v23 = vpop.f32.mrb[135].mxu1 }
 0x332   : > { %v3200_v13 = vadd.f32 %v3827_v8, %v5660_v28  ;;  %v3830_v62 = vadd.f32 %v3829_v22, %v3828_v14  ;;  %v3942_v24 = vadd.f32 %v3941_v23, %v3940_v15 }
 0x334   : > { %v3361_v26 = vadd.f32 %v3939_v11, %v3200_v13  ;;  %v3203_v27 = vadd.f32 %v3830_v62, %v5660_v28 }
 0x336   : > { %3481 = vst [vmem:[%s5667_s19 + $0x10] sm:$0xff] %v3361_v26  ;;  %v3364_v29 = vadd.f32 %v3942_v24, %v3203_v27  ;;  %v3831_v31 = vpop.f32.mrb[136].mxu0  ;;  %v3943_v34 = vpop.f32.mrb[136].mxu1 }
 0x337   : > { %v3832_v58 = vpop.f32.mrb[137].mxu0  ;;  %v3944_v12 = vpop.f32.mrb[137].mxu1 }
 0x338   : > { %3482 = vst [vmem:[%s5667_s19 + $0x18] sm:$0xff] %v3364_v29  ;;  %v3833_v17 = vadd.f32 %v3832_v58, %v3831_v31  ;;  %v3945_v52 = vadd.f32 %v3944_v12, %v3943_v34  ;;  %v3834_v59 = vpop.f32.mrb[138].mxu0  ;;  %v3946_v38 = vpop.f32.mrb[138].mxu1 }
 0x339   : > { %v3835_v32 = vpop.f32.mrb[139].mxu0  ;;  %v3947_v36 = vpop.f32.mrb[139].mxu1 }
 0x33a   : > { %v3208_v55 = vadd.f32 %v3833_v17, %v5660_v28  ;;  %v3836_v18 = vadd.f32 %v3835_v32, %v3834_v59  ;;  %v3948_v21 = vadd.f32 %v3947_v36, %v3946_v38 }
 0x33c   : > { %v3369_v40 = vadd.f32 %v3945_v52, %v3208_v55  ;;  %v3211_v37 = vadd.f32 %v3836_v18, %v5660_v28 }
 0x33e   : > { %3483 = vst [vmem:[%s5667_s19 + $0x20] sm:$0xff] %v3369_v40  ;;  %v3372_v60 = vadd.f32 %v3948_v21, %v3211_v37  ;;  %v3837_v5 = vpop.f32.mrb[140].mxu0  ;;  %v3949_v9 = vpop.f32.mrb[140].mxu1 }
 0x33f   : > { %v3838_v56 = vpop.f32.mrb[141].mxu0  ;;  %v3950_v0 = vpop.f32.mrb[141].mxu1 }
 0x340   : > { %3484 = vst [vmem:[%s5667_s19 + $0x28] sm:$0xff] %v3372_v60  ;;  %v3839_v48 = vadd.f32 %v3838_v56, %v3837_v5  ;;  %v3951_v51 = vadd.f32 %v3950_v0, %v3949_v9  ;;  %v3840_v44 = vpop.f32.mrb[142].mxu0  ;;  %v3952_v49 = vpop.f32.mrb[142].mxu1 }
 0x341   : > { %v3841_v19 = vpop.f32.mrb[143].mxu0  ;;  %v3953_v20 = vpop.f32.mrb[143].mxu1 }
 0x342   : > { %v3216_v57 = vadd.f32 %v3839_v48, %v5660_v28  ;;  %v3842_v42 = vadd.f32 %v3841_v19, %v3840_v44  ;;  %v3954_v35 = vadd.f32 %v3953_v20, %v3952_v49 }
 0x344   : > { %v3377_v45 = vadd.f32 %v3951_v51, %v3216_v57  ;;  %v3219_v39 = vadd.f32 %v3842_v42, %v5660_v28 }
 0x346   : > { %3485 = vst [vmem:[%s5667_s19 + $0x30] sm:$0xff] %v3377_v45  ;;  %v3380_v25 = vadd.f32 %v3954_v35, %v3219_v39  ;;  %v3843_v43 = vpop.f32.mrb[144].mxu0  ;;  %v3955_v46 = vpop.f32.mrb[144].mxu1 }
 0x347   : > { %v3844_v6 = vpop.f32.mrb[145].mxu0  ;;  %v3956_v47 = vpop.f32.mrb[145].mxu1 }
 0x348   : > { %3486 = vst [vmem:[%s5667_s19 + $0x38] sm:$0xff] %v3380_v25  ;;  %v3845_v50 = vadd.f32 %v3844_v6, %v3843_v43  ;;  %v3957_v54 = vadd.f32 %v3956_v47, %v3955_v46  ;;  %v3846_v10 = vpop.f32.mrb[146].mxu0  ;;  %v3958_v63 = vpop.f32.mrb[146].mxu1 }
 0x349   : > { %v3847_v41 = vpop.f32.mrb[147].mxu0  ;;  %v3959_v53 = vpop.f32.mrb[147].mxu1 }
 0x34a   : > { %v3224_v33 = vadd.f32 %v3845_v50, %v5660_v28  ;;  %v3848_v1 = vadd.f32 %v3847_v41, %v3846_v10  ;;  %v3960_v61 = vadd.f32 %v3959_v53, %v3958_v63 }
 0x34c   : > { %v3385_v4 = vadd.f32 %v3957_v54, %v3224_v33  ;;  %v3227_v7 = vadd.f32 %v3848_v1, %v5660_v28 }
 0x34e   : > { %3487 = vst [vmem:[%s5667_s19 + $0x40] sm:$0xff] %v3385_v4  ;;  %v3388_v2 = vadd.f32 %v3960_v61, %v3227_v7  ;;  %v3849_v3 = vpop.f32.mrb[148].mxu0  ;;  %v3961_v30 = vpop.f32.mrb[148].mxu1 }
 0x34f   : > { %v3850_v16 = vpop.f32.mrb[149].mxu0  ;;  %v3962_v8 = vpop.f32.mrb[149].mxu1 }
 0x350   : > { %3488 = vst [vmem:[%s5667_s19 + $0x48] sm:$0xff] %v3388_v2  ;;  %v3851_v11 = vadd.f32 %v3850_v16, %v3849_v3  ;;  %v3963_v14 = vadd.f32 %v3962_v8, %v3961_v30  ;;  %v3852_v15 = vpop.f32.mrb[150].mxu0  ;;  %v3964_v22 = vpop.f32.mrb[150].mxu1 }
 0x351   : > { %v3853_v23 = vpop.f32.mrb[151].mxu0  ;;  %v3965_v13 = vpop.f32.mrb[151].mxu1 }
 0x352   : > { %v3232_v62 = vadd.f32 %v3851_v11, %v5660_v28  ;;  %v3854_v24 = vadd.f32 %v3853_v23, %v3852_v15  ;;  %v3966_v26 = vadd.f32 %v3965_v13, %v3964_v22 }
 0x354   : > { %v3393_v27 = vadd.f32 %v3963_v14, %v3232_v62  ;;  %v3235_v29 = vadd.f32 %v3854_v24, %v5660_v28 }
 0x356   : > { %3489 = vst [vmem:[%s5667_s19 + $0x50] sm:$0xff] %v3393_v27  ;;  %v3396_v31 = vadd.f32 %v3966_v26, %v3235_v29  ;;  %v3855_v34 = vpop.f32.mrb[152].mxu0  ;;  %v3967_v58 = vpop.f32.mrb[152].mxu1 }
 0x357   : > { %v3856_v12 = vpop.f32.mrb[153].mxu0  ;;  %v3968_v17 = vpop.f32.mrb[153].mxu1 }
 0x358   : > { %3490 = vst [vmem:[%s5667_s19 + $0x58] sm:$0xff] %v3396_v31  ;;  %v3857_v52 = vadd.f32 %v3856_v12, %v3855_v34  ;;  %v3969_v59 = vadd.f32 %v3968_v17, %v3967_v58  ;;  %v3858_v38 = vpop.f32.mrb[154].mxu0  ;;  %v3970_v32 = vpop.f32.mrb[154].mxu1 }
 0x359   : > { %v3859_v36 = vpop.f32.mrb[155].mxu0  ;;  %v3971_v55 = vpop.f32.mrb[155].mxu1 }
 0x35a   : > { %v3240_v18 = vadd.f32 %v3857_v52, %v5660_v28  ;;  %v3860_v21 = vadd.f32 %v3859_v36, %v3858_v38  ;;  %v3972_v40 = vadd.f32 %v3971_v55, %v3970_v32 }
 0x35c   : > { %v3401_v37 = vadd.f32 %v3969_v59, %v3240_v18  ;;  %v3243_v60 = vadd.f32 %v3860_v21, %v5660_v28 }
 0x35e   : > { %3491 = vst [vmem:[%s5667_s19 + $0x60] sm:$0xff] %v3401_v37  ;;  %v3404_v5 = vadd.f32 %v3972_v40, %v3243_v60  ;;  %v3861_v9 = vpop.f32.mrb[156].mxu0  ;;  %v3973_v56 = vpop.f32.mrb[156].mxu1 }
 0x35f   : > { %v3862_v0 = vpop.f32.mrb[157].mxu0  ;;  %v3974_v48 = vpop.f32.mrb[157].mxu1 }
 0x360   : > { %3492 = vst [vmem:[%s5667_s19 + $0x68] sm:$0xff] %v3404_v5  ;;  %v3863_v51 = vadd.f32 %v3862_v0, %v3861_v9  ;;  %v3975_v44 = vadd.f32 %v3974_v48, %v3973_v56  ;;  %v3864_v49 = vpop.f32.mrb[158].mxu0  ;;  %v3976_v19 = vpop.f32.mrb[158].mxu1 }
 0x361   : > { %v3865_v20 = vpop.f32.mrb[159].mxu0  ;;  %v3977_v57 = vpop.f32.mrb[159].mxu1 }
 0x362   : > { %v3248_v42 = vadd.f32 %v3863_v51, %v5660_v28  ;;  %v3866_v35 = vadd.f32 %v3865_v20, %v3864_v49  ;;  %v3978_v45 = vadd.f32 %v3977_v57, %v3976_v19 }
 0x364   : > { %v3409_v39 = vadd.f32 %v3975_v44, %v3248_v42  ;;  %v3251_v25 = vadd.f32 %v3866_v35, %v5660_v28 }
 0x366   : > { %3493 = vst [vmem:[%s5667_s19 + $0x70] sm:$0xff] %v3409_v39  ;;  %v3412_v43 = vadd.f32 %v3978_v45, %v3251_v25  ;;  %v3867_v46 = vpop.f32.mrb[160].mxu0  ;;  %v3979_v6 = vpop.f32.mrb[160].mxu1 }
 0x367   : > { %v3868_v47 = vpop.f32.mrb[161].mxu0  ;;  %v3980_v50 = vpop.f32.mrb[161].mxu1 }
 0x368   : > { %3494 = vst [vmem:[%s5667_s19 + $0x78] sm:$0xff] %v3412_v43  ;;  %v3869_v54 = vadd.f32 %v3868_v47, %v3867_v46  ;;  %v3981_v10 = vadd.f32 %v3980_v50, %v3979_v6  ;;  %v3870_v63 = vpop.f32.mrb[162].mxu0  ;;  %v3982_v41 = vpop.f32.mrb[162].mxu1 }
 0x369   : > { %v3871_v53 = vpop.f32.mrb[163].mxu0  ;;  %v3983_v33 = vpop.f32.mrb[163].mxu1 }
 0x36a   : > { %v3256_v1 = vadd.f32 %v3869_v54, %v5660_v28  ;;  %v3872_v61 = vadd.f32 %v3871_v53, %v3870_v63  ;;  %v3984_v4 = vadd.f32 %v3983_v33, %v3982_v41 }
 0x36c   : > { %v3417_v7 = vadd.f32 %v3981_v10, %v3256_v1  ;;  %v3259_v2 = vadd.f32 %v3872_v61, %v5660_v28 }
 0x36e   : > { %3495 = vst [vmem:[%s5667_s19 + $0x80] sm:$0xff] %v3417_v7  ;;  %v3420_v3 = vadd.f32 %v3984_v4, %v3259_v2  ;;  %v3873_v30 = vpop.f32.mrb[164].mxu0  ;;  %v3985_v16 = vpop.f32.mrb[164].mxu1 }
 0x36f   : > { %v3874_v8 = vpop.f32.mrb[165].mxu0  ;;  %v3986_v11 = vpop.f32.mrb[165].mxu1 }
 0x370   : > { %3496 = vst [vmem:[%s5667_s19 + $0x88] sm:$0xff] %v3420_v3  ;;  %v3875_v14 = vadd.f32 %v3874_v8, %v3873_v30  ;;  %v3987_v15 = vadd.f32 %v3986_v11, %v3985_v16  ;;  %v3876_v22 = vpop.f32.mrb[166].mxu0  ;;  %v3988_v23 = vpop.f32.mrb[166].mxu1 }
 0x371   : > { %v3877_v13 = vpop.f32.mrb[167].mxu0  ;;  %v3989_v62 = vpop.f32.mrb[167].mxu1 }
 0x372   : > { %v3264_v24 = vadd.f32 %v3875_v14, %v5660_v28  ;;  %v3878_v26 = vadd.f32 %v3877_v13, %v3876_v22  ;;  %v3990_v27 = vadd.f32 %v3989_v62, %v3988_v23 }
 0x374   : > { %v3425_v29 = vadd.f32 %v3987_v15, %v3264_v24  ;;  %v3267_v31 = vadd.f32 %v3878_v26, %v5660_v28 }
 0x376   : > { %3497 = vst [vmem:[%s5667_s19 + $0x90] sm:$0xff] %v3425_v29  ;;  %v3428_v34 = vadd.f32 %v3990_v27, %v3267_v31  ;;  %v3879_v58 = vpop.f32.mrb[168].mxu0  ;;  %v3991_v12 = vpop.f32.mrb[168].mxu1 }
 0x377   : > { %v3880_v17 = vpop.f32.mrb[169].mxu0  ;;  %v3992_v52 = vpop.f32.mrb[169].mxu1 }
 0x378   : > { %3498 = vst [vmem:[%s5667_s19 + $0x98] sm:$0xff] %v3428_v34  ;;  %v3881_v59 = vadd.f32 %v3880_v17, %v3879_v58  ;;  %v3993_v38 = vadd.f32 %v3992_v52, %v3991_v12  ;;  %v3882_v32 = vpop.f32.mrb[170].mxu0  ;;  %v3994_v36 = vpop.f32.mrb[170].mxu1 }
 0x379   : > { %v3883_v55 = vpop.f32.mrb[171].mxu0  ;;  %v3995_v18 = vpop.f32.mrb[171].mxu1 }
 0x37a   : > { %v3272_v21 = vadd.f32 %v3881_v59, %v5660_v28  ;;  %v3884_v40 = vadd.f32 %v3883_v55, %v3882_v32  ;;  %v3996_v37 = vadd.f32 %v3995_v18, %v3994_v36 }
 0x37c   : > { %v3433_v60 = vadd.f32 %v3993_v38, %v3272_v21  ;;  %v3275_v5 = vadd.f32 %v3884_v40, %v5660_v28 }
 0x37e   : > { %3499 = vst [vmem:[%s5667_s19 + $0xa0] sm:$0xff] %v3433_v60  ;;  %v3436_v9 = vadd.f32 %v3996_v37, %v3275_v5  ;;  %v3885_v56 = vpop.f32.mrb[172].mxu0  ;;  %v3997_v0 = vpop.f32.mrb[172].mxu1 }
 0x37f   : > { %v3886_v48 = vpop.f32.mrb[173].mxu0  ;;  %v3998_v51 = vpop.f32.mrb[173].mxu1 }
 0x380   : > { %3500 = vst [vmem:[%s5667_s19 + $0xa8] sm:$0xff] %v3436_v9  ;;  %v3887_v44 = vadd.f32 %v3886_v48, %v3885_v56  ;;  %v3999_v49 = vadd.f32 %v3998_v51, %v3997_v0  ;;  %v3888_v19 = vpop.f32.mrb[174].mxu0  ;;  %v4000_v20 = vpop.f32.mrb[174].mxu1 }
 0x381   : > { %v3889_v57 = vpop.f32.mrb[175].mxu0  ;;  %v4001_v42 = vpop.f32.mrb[175].mxu1 }
 0x382   : > { %v3280_v35 = vadd.f32 %v3887_v44, %v5660_v28  ;;  %v3890_v45 = vadd.f32 %v3889_v57, %v3888_v19  ;;  %v4002_v39 = vadd.f32 %v4001_v42, %v4000_v20 }
 0x384   : > { %v3441_v25 = vadd.f32 %v3999_v49, %v3280_v35  ;;  %v3283_v43 = vadd.f32 %v3890_v45, %v5660_v28 }
 0x386   : > { %3501 = vst [vmem:[%s5667_s19 + $0xb0] sm:$0xff] %v3441_v25  ;;  %v3444_v46 = vadd.f32 %v4002_v39, %v3283_v43  ;;  %v3891_v6 = vpop.f32.mrb[176].mxu0  ;;  %v4003_v47 = vpop.f32.mrb[176].mxu1 }
 0x387   : > { %v3892_v50 = vpop.f32.mrb[177].mxu0  ;;  %v4004_v54 = vpop.f32.mrb[177].mxu1 }
 0x388   : > { %3502 = vst [vmem:[%s5667_s19 + $0xb8] sm:$0xff] %v3444_v46  ;;  %v3893_v10 = vadd.f32 %v3892_v50, %v3891_v6  ;;  %v4005_v63 = vadd.f32 %v4004_v54, %v4003_v47  ;;  %v3894_v41 = vpop.f32.mrb[178].mxu0  ;;  %v4006_v53 = vpop.f32.mrb[178].mxu1 }
 0x389   : > { %v3895_v33 = vpop.f32.mrb[179].mxu0  ;;  %v4007_v1 = vpop.f32.mrb[179].mxu1 }
 0x38a   : > { %v3288_v61 = vadd.f32 %v3893_v10, %v5660_v28  ;;  %v3896_v4 = vadd.f32 %v3895_v33, %v3894_v41  ;;  %v4008_v7 = vadd.f32 %v4007_v1, %v4006_v53 }
 0x38c   : > { %v3449_v2 = vadd.f32 %v4005_v63, %v3288_v61  ;;  %v3291_v3 = vadd.f32 %v3896_v4, %v5660_v28 }
 0x38e   : > { %3503 = vst [vmem:[%s5667_s19 + $0xc0] sm:$0xff] %v3449_v2  ;;  %v3452_v30 = vadd.f32 %v4008_v7, %v3291_v3  ;;  %v3897_v16 = vpop.f32.mrb[180].mxu0  ;;  %v4009_v8 = vpop.f32.mrb[180].mxu1 }
 0x38f   : > { %v3898_v11 = vpop.f32.mrb[181].mxu0  ;;  %v4010_v14 = vpop.f32.mrb[181].mxu1 }
 0x390   : > { %3504 = vst [vmem:[%s5667_s19 + $0xc8] sm:$0xff] %v3452_v30  ;;  %v3899_v15 = vadd.f32 %v3898_v11, %v3897_v16  ;;  %v4011_v22 = vadd.f32 %v4010_v14, %v4009_v8  ;;  %v3900_v23 = vpop.f32.mrb[182].mxu0  ;;  %v4012_v13 = vpop.f32.mrb[182].mxu1 }
 0x391   : > { %v3901_v62 = vpop.f32.mrb[183].mxu0  ;;  %v4013_v24 = vpop.f32.mrb[183].mxu1 }
 0x392   : > { %v3296_v26 = vadd.f32 %v3899_v15, %v5660_v28  ;;  %v3902_v27 = vadd.f32 %v3901_v62, %v3900_v23  ;;  %v4014_v29 = vadd.f32 %v4013_v24, %v4012_v13 }
 0x394   : > { %v3457_v31 = vadd.f32 %v4011_v22, %v3296_v26  ;;  %v3299_v34 = vadd.f32 %v3902_v27, %v5660_v28 }
 0x396   : > { %3505 = vst [vmem:[%s5667_s19 + $0xd0] sm:$0xff] %v3457_v31  ;;  %v3460_v58 = vadd.f32 %v4014_v29, %v3299_v34  ;;  %v3903_v12 = vpop.f32.mrb[184].mxu0  ;;  %v4015_v17 = vpop.f32.mrb[184].mxu1 }
 0x397   : > { %v3904_v52 = vpop.f32.mrb[185].mxu0  ;;  %v4016_v59 = vpop.f32.mrb[185].mxu1 }
 0x398   : > { %3506 = vst [vmem:[%s5667_s19 + $0xd8] sm:$0xff] %v3460_v58  ;;  %v3905_v38 = vadd.f32 %v3904_v52, %v3903_v12  ;;  %v4017_v32 = vadd.f32 %v4016_v59, %v4015_v17  ;;  %v3906_v36 = vpop.f32.mrb[186].mxu0  ;;  %v4018_v55 = vpop.f32.mrb[186].mxu1 }
 0x399   : > { %v3907_v18 = vpop.f32.mrb[187].mxu0  ;;  %v4019_v21 = vpop.f32.mrb[187].mxu1 }
 0x39a   : > { %v3304_v40 = vadd.f32 %v3905_v38, %v5660_v28  ;;  %v3908_v37 = vadd.f32 %v3907_v18, %v3906_v36  ;;  %v4020_v60 = vadd.f32 %v4019_v21, %v4018_v55 }
 0x39c   : > { %v3465_v5 = vadd.f32 %v4017_v32, %v3304_v40  ;;  %v3307_v9 = vadd.f32 %v3908_v37, %v5660_v28 }
 0x39e   : > { %3507 = vst [vmem:[%s5667_s19 + $0xe0] sm:$0xff] %v3465_v5  ;;  %v3468_v56 = vadd.f32 %v4020_v60, %v3307_v9  ;;  %v3909_v0 = vpop.f32.mrb[188].mxu0  ;;  %v4021_v48 = vpop.f32.mrb[188].mxu1 }
 0x39f   : > { %v3910_v51 = vpop.f32.mrb[189].mxu0  ;;  %v4022_v44 = vpop.f32.mrb[189].mxu1 }
 0x3a0   : > { %3508 = vst [vmem:[%s5667_s19 + $0xe8] sm:$0xff] %v3468_v56  ;;  %v3911_v49 = vadd.f32 %v3910_v51, %v3909_v0  ;;  %v4023_v19 = vadd.f32 %v4022_v44, %v4021_v48  ;;  %v3912_v20 = vpop.f32.mrb[190].mxu0  ;;  %v4024_v57 = vpop.f32.mrb[190].mxu1 }
 0x3a1   : > { %v3913_v42 = vpop.f32.mrb[191].mxu0  ;;  %v4025_v35 = vpop.f32.mrb[191].mxu1 }
 0x3a2   : > { %v3312_v45 = vadd.f32 %v3911_v49, %v5660_v28  ;;  %v3914_v39 = vadd.f32 %v3913_v42, %v3912_v20  ;;  %v4026_v25 = vadd.f32 %v4025_v35, %v4024_v57 }
 0x3a4   : > { %v3473_v43 = vadd.f32 %v4023_v19, %v3312_v45  ;;  %v3315_v46 = vadd.f32 %v3914_v39, %v5660_v28 }
 0x3a6   : > { %3509 = vst [vmem:[%s5667_s19 + $0xf0] sm:$0xff] %v3473_v43  ;;  %v3476_v6 = vadd.f32 %v4026_v25, %v3315_v46 }
 0x3a8   : > { %3510 = vst [vmem:[%s5667_s19 + $0xf8] sm:$0xff] %v3476_v6 }
 0x3a9 PF: > { %s17_s24 = sadd.s32 1, %s4562_s24  }
 0x3aa   : > { %p14_p4 = scmp.ge.s32.totalorder %s17_s24, 4  }
 0x3ac   :  { %16 = sbr.rel (!%p14_p4) target bundleno = 1 (0x1), region = 78 }

</bundles_post_ra>
